<compile_context>
chip_gen: v6e
topology: v6e:2x2x1
jax: 0.10.0
libtpu: 0.0.40
codegen_flags: <defaults>
</compile_context>

<pallas_src>
import functools

import jax
import jax.numpy as jnp
from jax.experimental import pallas as pl
from jax.experimental.pallas import tpu as pltpu

D_MODEL = 32
NUM_HEADS = 4
LN_EPS = 1e-5          # PyTorch nn.LayerNorm default
NEG_BIG = -1e30        # finite stand-in for -inf (avoids inf-inf = NaN)


def _vmem():
    # Whole-array blocks resident in VMEM (all operands here are tiny).
    return pl.BlockSpec(memory_space=pltpu.MemorySpace.VMEM)


# --------------------------- fused decoder-block kernel ---------------------------

def _decoder_block_kernel(
    x_ref,        # [B, Sd, D]
    kv1_ref,      # [B, S1, D]   (prev, or x again when prev is None; unread if shared)
    enc_ref,      # [B, Se, D]   (K_V)
    mask1_ref,    # [B, Sd, S1]  float 0/1 look-ahead mask (unread if not use_mask1)
    mask2_ref,    # [B, Sd, Se]  float 0/1 pad mask        (unread if not use_mask2)
    wq1_h_ref,    # [H, D, dk]   masked-attn Q_Linear (shared for Q/K/V), per-head view
    wo1_h_ref,    # [H, dk, D]   masked-attn output linear, per-head view
    wq2_h_ref,    # [H, D, dk]   enc-dec attn Q_Linear (shared for Q/K/V), per-head view
    wo2_h_ref,    # [H, dk, D]   enc-dec attn output linear, per-head view
    ln_g_ref,     # [1, D]
    ln_b_ref,     # [1, D]
    fc_w1_ref,    # [D, 4D]
    fc_b1_ref,    # [1, 4D]
    fc_w2_ref,    # [4D, D]
    fc_b2_ref,    # [1, D]
    o_ref,        # [B, Sd, D]
    *, num_heads, share_qkv1, use_mask1, use_mask2,
):
    B, Sd, D = x_ref.shape
    Se = enc_ref.shape[1]
    H = num_heads
    dk = D // H
    scale = 1.0 / float(dk) ** 0.5

    gamma = ln_g_ref[...]          # [1, D]
    beta = ln_b_ref[...]           # [1, D]

    def layernorm(t2):             # t2: [N, D]
        mu = jnp.mean(t2, axis=-1, keepdims=True)
        var = jnp.mean((t2 - mu) ** 2, axis=-1, keepdims=True)
        return (t2 - mu) * jax.lax.rsqrt(var + LN_EPS) * gamma + beta

    def mha(q3, kv3, wq_h_ref, wo_h_ref, mask, use_mask):
        # q3: [B, Sq, D] (already LayerNorm'ed); kv3: [B, Sk, D] or None (== q3).
        Sq = q3.shape[1]
        q2 = q3.reshape(B * Sq, D)
        if kv3 is None:
            kv2, Sk = q2, Sq
        else:
            Sk = kv3.shape[1]
            kv2 = kv3.reshape(B * Sk, D)

        out = None
        for h in range(H):                             # H=4, statically unrolled
            wq = wq_h_ref[h]                           # [D, dk]
            qh = jnp.dot(q2, wq, preferred_element_type=jnp.float32).reshape(B, Sq, dk)
            if kv3 is None:
                kh = qh                                # Q == K == V projection (shared weight & input)
            else:
                kh = jnp.dot(kv2, wq, preferred_element_type=jnp.float32).reshape(B, Sk, dk)
            vh = kh                                    # K == V projection (same weight & input)

            s = jnp.einsum('bqd,bkd->bqk', qh, kh,
                           preferred_element_type=jnp.float32)      # [B, Sq, Sk]
            if use_mask:
                s = jnp.where(mask > 0.5, NEG_BIG, s)  # masked_fill_(mask, -inf) equivalent
            s = s * scale                              # softmax(w / dk**0.5)
            s = s - jnp.max(s, axis=-1, keepdims=True)
            p = jnp.exp(s)
            p = p * pl.reciprocal(jnp.sum(p, axis=-1, keepdims=True), approx=True)

            ch = jnp.einsum('bqk,bkd->bqd', p, vh,
                            preferred_element_type=jnp.float32)     # [B, Sq, dk]
            # Head-concat + output projection folded into per-head matmul-accumulate.
            part = jnp.dot(ch.reshape(B * Sq, dk), wo_h_ref[h],
                           preferred_element_type=jnp.float32)      # [B*Sq, D]
            out = part if out is None else out + part
        return out                                     # [B*Sq, D]

    x2 = x_ref[...].reshape(B * Sd, D)

    # --- attention 1: masked self-attention (prev is None) or cross-attn with prev ---
    z0 = layernorm(x2)
    q3 = z0.reshape(B, Sd, D)
    if share_qkv1:
        m1 = mask1_ref[...] if use_mask1 else None
        a1 = mha(q3, None, wq1_h_ref, wo1_h_ref, m1, use_mask1)
    else:
        S1 = kv1_ref.shape[1]
        kv3 = layernorm(kv1_ref[...].reshape(B * S1, D)).reshape(B, S1, D)
        a1 = mha(q3, kv3, wq1_h_ref, wo1_h_ref, None, False)
    z1 = x2 + a1                                       # residual add in-kernel

    # --- attention 2: encoder-decoder attention ---
    q3b = layernorm(z1).reshape(B, Sd, D)
    kvb = layernorm(enc_ref[...].reshape(B * Se, D)).reshape(B, Se, D)
    m2 = mask2_ref[...] if use_mask2 else None
    a2 = mha(q3b, kvb, wq2_h_ref, wo2_h_ref, m2, use_mask2)
    z2 = z1 + a2

    # --- position-wise FFN ---
    z2n = layernorm(z2)
    h1 = jnp.dot(z2n, fc_w1_ref[...], preferred_element_type=jnp.float32) + fc_b1_ref[...]
    h1 = jnp.maximum(h1, 0.0)                          # ReLU (use_leaky_relu=False)
    ff = jnp.dot(h1, fc_w2_ref[...], preferred_element_type=jnp.float32) + fc_b2_ref[...]
    z3 = z2 + ff

    o_ref[...] = z3.reshape(B, Sd, D)


# ----------------------------------- wrapper -----------------------------------

def decoder_block(x, K_V, pad_mask, prev, look_ahead_mask, params):
    B, Sd, D = x.shape
    Se = K_V.shape[1]
    H = NUM_HEADS
    dk = D // H

    has_prev = prev is not None
    kv1 = prev if has_prev else x                      # unread in kernel when shared
    S1 = kv1.shape[1]

    use_mask1 = (not has_prev) and (look_ahead_mask is not None)
    use_mask2 = pad_mask is not None

    mask1 = (look_ahead_mask.astype(jnp.float32) if use_mask1
             else jnp.zeros((B, Sd, S1), jnp.float32))
    mask2 = (pad_mask.astype(jnp.float32) if use_mask2
             else jnp.zeros((B, Sd, Se), jnp.float32))

    # Per-head weight views, built once at the XLA level so the kernel never
    # lane-slices at dk=8 offsets.  wq_t/wo_t are the transposed nn.Linear
    # weights ([Din, Dout]); split of the projection output columns == split of
    # wq_t columns, split of the concat input rows == split of wo_t rows.
    wq1_h = params['mh1']['wq_t'].reshape(D, H, dk).transpose(1, 0, 2)   # [H, D, dk]
    wo1_h = params['mh1']['wo_t'].reshape(H, dk, D)                      # [H, dk, D]
    wq2_h = params['mh2']['wq_t'].reshape(D, H, dk).transpose(1, 0, 2)
    wo2_h = params['mh2']['wo_t'].reshape(H, dk, D)

    kern = functools.partial(
        _decoder_block_kernel,
        num_heads=H,
        share_qkv1=not has_prev,
        use_mask1=use_mask1,
        use_mask2=use_mask2,
    )

    z = pl.pallas_call(
        kern,
        out_shape=jax.ShapeDtypeStruct((B, Sd, D), jnp.float32),
        in_specs=[_vmem()] * 15,
        out_specs=_vmem(),
    )(x, kv1, K_V, mask1, mask2,
      wq1_h, wo1_h, wq2_h, wo2_h,
      params['ln_g'].reshape(1, D), params['ln_b'].reshape(1, D),
      params['fc_w1_t'], params['fc_b1'].reshape(1, -1),
      params['fc_w2_t'], params['fc_b2'].reshape(1, -1))

    return z, K_V, pad_mask, prev, look_ahead_mask


def init_params(key, d_model):
    ks = jax.random.split(key, 10)

    def w(k, shape, scale=0.1):
        return jax.random.normal(k, shape, jnp.float32) * scale

    return {
        'ln_g': 1.0 + w(ks[0], (d_model,)),
        'ln_b': w(ks[1], (d_model,)),
        'mh1': {'wq_t': w(ks[2], (d_model, d_model)),
                'wo_t': w(ks[3], (d_model, d_model))},
        'mh2': {'wq_t': w(ks[4], (d_model, d_model)),
                'wo_t': w(ks[5], (d_model, d_model))},
        'fc_w1_t': w(ks[6], (d_model, 4 * d_model)),
        'fc_b1': w(ks[7], (4 * d_model,)),
        'fc_w2_t': w(ks[8], (4 * d_model, d_model)),
        'fc_b2': w(ks[9], (d_model,)),
    }


if __name__ == "__main__":
    key = jax.random.PRNGKey(0)
    kp, kx, kkv = jax.random.split(key, 3)

    B, S_dec, S_enc, D = 2, 8, 8, D_MODEL
    params = init_params(kp, D)

    x = jax.random.normal(kx, (B, S_dec, D), jnp.float32)
    K_V = jax.random.normal(kkv, (B, S_enc, D), jnp.float32)
    # Look-ahead mask: True above the diagonal (future positions are masked).
    look_ahead_mask = jnp.broadcast_to(
        jnp.triu(jnp.ones((S_dec, S_dec), jnp.bool_), k=1), (B, S_dec, S_dec))
    # Pad mask: batch 1 has its last 2 encoder positions padded.
    pad_mask = jnp.zeros((B, S_dec, S_enc), jnp.bool_).at[1, :, S_enc - 2:].set(True)

    decoder_fn = jax.jit(decoder_block)
    out = decoder_fn(x, K_V, pad_mask, None, look_ahead_mask, params)
    z = jax.block_until_ready(out[0])

    assert z.shape == (B, S_dec, D)
    assert bool(jnp.all(jnp.isfinite(z)))
    print("KERNEL_OK")
</pallas_src>

<mosaic_0001>
module attributes {stable_mosaic.version = 11 : i64} {
  func.func @_decoder_block_kernel(%arg0: memref<2x8x32xf32, #tpu.memory_space<vmem>>, %arg1: memref<2x8x32xf32, #tpu.memory_space<vmem>>, %arg2: memref<2x8x32xf32, #tpu.memory_space<vmem>>, %arg3: memref<2x8x8xf32, #tpu.memory_space<vmem>>, %arg4: memref<2x8x8xf32, #tpu.memory_space<vmem>>, %arg5: memref<4x32x8xf32, #tpu.memory_space<vmem>>, %arg6: memref<4x8x32xf32, #tpu.memory_space<vmem>>, %arg7: memref<4x32x8xf32, #tpu.memory_space<vmem>>, %arg8: memref<4x8x32xf32, #tpu.memory_space<vmem>>, %arg9: memref<1x32xf32, #tpu.memory_space<vmem>>, %arg10: memref<1x32xf32, #tpu.memory_space<vmem>>, %arg11: memref<32x128xf32, #tpu.memory_space<vmem>>, %arg12: memref<1x128xf32, #tpu.memory_space<vmem>>, %arg13: memref<128x32xf32, #tpu.memory_space<vmem>>, %arg14: memref<1x32xf32, #tpu.memory_space<vmem>>, %arg15: memref<2x8x32xf32, #tpu.memory_space<vmem>>) attributes {dimension_semantics = [], scalar_prefetch = 0 : i64, scratch_operands = 0 : i64, tpu.core_type = #tpu.core_type<tc>} {
    %c0 = arith.constant 0 : index
    %c0_0 = arith.constant 0 : index
    %0 = vector.load %arg9[%c0, %c0_0] : memref<1x32xf32, #tpu.memory_space<vmem>>, vector<1x32xf32>
    %c0_1 = arith.constant 0 : index
    %c0_2 = arith.constant 0 : index
    %1 = vector.load %arg10[%c0_1, %c0_2] : memref<1x32xf32, #tpu.memory_space<vmem>>, vector<1x32xf32>
    %c0_3 = arith.constant 0 : index
    %c0_4 = arith.constant 0 : index
    %c0_5 = arith.constant 0 : index
    %2 = vector.load %arg0[%c0_3, %c0_4, %c0_5] : memref<2x8x32xf32, #tpu.memory_space<vmem>>, vector<2x8x32xf32>
    %3 = vector.shape_cast %2 : vector<2x8x32xf32> to vector<16x32xf32>
    %cst = arith.constant dense<0.000000e+00> : vector<16xf32>
    %4 = vector.multi_reduction <add>, %3, %cst [1] : vector<16x32xf32> to vector<16xf32>
    %5 = vector.shape_cast %4 : vector<16xf32> to vector<16x1xf32>
    %cst_6 = arith.constant 3.200000e+01 : f32
    %6 = vector.broadcast %cst_6 : f32 to vector<16x1xf32>
    %7 = arith.divf %5, %6 : vector<16x1xf32>
    %8 = vector.broadcast %7 : vector<16x1xf32> to vector<16x32xf32>
    %9 = arith.subf %3, %8 : vector<16x32xf32>
    %10 = arith.mulf %9, %9 : vector<16x32xf32>
    %cst_7 = arith.constant dense<0.000000e+00> : vector<16xf32>
    %11 = vector.multi_reduction <add>, %10, %cst_7 [1] : vector<16x32xf32> to vector<16xf32>
    %12 = vector.shape_cast %11 : vector<16xf32> to vector<16x1xf32>
    %cst_8 = arith.constant 3.200000e+01 : f32
    %13 = vector.broadcast %cst_8 : f32 to vector<16x1xf32>
    %14 = arith.divf %12, %13 : vector<16x1xf32>
    %15 = vector.broadcast %7 : vector<16x1xf32> to vector<16x32xf32>
    %16 = arith.subf %3, %15 : vector<16x32xf32>
    %cst_9 = arith.constant 9.99999974E-6 : f32
    %17 = vector.broadcast %cst_9 : f32 to vector<16x1xf32>
    %18 = arith.addf %14, %17 : vector<16x1xf32>
    %19 = math.rsqrt %18 : vector<16x1xf32>
    %20 = vector.broadcast %19 : vector<16x1xf32> to vector<16x32xf32>
    %21 = arith.mulf %16, %20 : vector<16x32xf32>
    %22 = vector.broadcast %0 : vector<1x32xf32> to vector<16x32xf32>
    %23 = arith.mulf %21, %22 : vector<16x32xf32>
    %24 = vector.broadcast %1 : vector<1x32xf32> to vector<16x32xf32>
    %25 = arith.addf %23, %24 : vector<16x32xf32>
    %26 = vector.shape_cast %25 : vector<16x32xf32> to vector<2x8x32xf32>
    %c0_10 = arith.constant 0 : index
    %c0_11 = arith.constant 0 : index
    %c0_12 = arith.constant 0 : index
    %27 = vector.load %arg3[%c0_10, %c0_11, %c0_12] : memref<2x8x8xf32, #tpu.memory_space<vmem>>, vector<2x8x8xf32>
    %28 = vector.shape_cast %26 : vector<2x8x32xf32> to vector<16x32xf32>
    %c0_13 = arith.constant 0 : index
    %c0_14 = arith.constant 0 : index
    %c0_15 = arith.constant 0 : index
    %29 = vector.load %arg5[%c0_13, %c0_14, %c0_15] : memref<4x32x8xf32, #tpu.memory_space<vmem>>, vector<1x32x8xf32>
    %30 = vector.shape_cast %29 : vector<1x32x8xf32> to vector<32x8xf32>
    %cst_16 = arith.constant dense<0.000000e+00> : vector<16x8xf32>
    %31 = tpu.matmul %28, %30, %cst_16 {dimension_numbers = #tpu.dot_dimension_numbers<[1], [0], [0], [1], [0, 0, 1, 1], [], []>} : vector<16x32xf32>, vector<32x8xf32>, vector<16x8xf32> -> vector<16x8xf32>
    %32 = vector.shape_cast %31 : vector<16x8xf32> to vector<2x8x8xf32>
    "tpu.trace_start"() <{level = 10 : i32, message = "bqd,bkd->bqk"}> : () -> ()
    %cst_17 = arith.constant dense<0.000000e+00> : vector<2x8x8xf32>
    %33 = tpu.matmul %32, %32, %cst_17 {dimension_numbers = #tpu.dot_dimension_numbers<[2], [2], [1], [1], [0, 0, 0, 1, 1, 1], [0], [0]>} : vector<2x8x8xf32>, vector<2x8x8xf32>, vector<2x8x8xf32> -> vector<2x8x8xf32>
    %cst_18 = arith.constant 5.000000e-01 : f32
    "tpu.trace_stop"() : () -> ()
    %34 = vector.broadcast %cst_18 : f32 to vector<2x8x8xf32>
    %35 = arith.cmpf ogt, %27, %34 : vector<2x8x8xf32>
    %cst_19 = arith.constant -1.000000e+30 : f32
    %36 = vector.broadcast %cst_19 : f32 to vector<2x8x8xf32>
    %37 = arith.select %35, %36, %33 : vector<2x8x8xi1>, vector<2x8x8xf32>
    %cst_20 = arith.constant 0.353553385 : f32
    %38 = vector.broadcast %cst_20 : f32 to vector<2x8x8xf32>
    %39 = arith.mulf %37, %38 : vector<2x8x8xf32>
    %cst_21 = arith.constant dense<0xFF800000> : vector<2x8xf32>
    %40 = vector.multi_reduction <maximumf>, %39, %cst_21 [2] : vector<2x8x8xf32> to vector<2x8xf32>
    %41 = vector.shape_cast %40 : vector<2x8xf32> to vector<2x8x1xf32>
    %42 = vector.broadcast %41 : vector<2x8x1xf32> to vector<2x8x8xf32>
    %43 = arith.subf %39, %42 : vector<2x8x8xf32>
    %44 = math.exp %43 : vector<2x8x8xf32>
    %cst_22 = arith.constant dense<0.000000e+00> : vector<2x8xf32>
    %45 = vector.multi_reduction <add>, %44, %cst_22 [2] : vector<2x8x8xf32> to vector<2x8xf32>
    %46 = vector.shape_cast %45 : vector<2x8xf32> to vector<2x8x1xf32>
    %47 = tpu.reciprocal %46 {approx = true} : vector<2x8x1xf32> -> vector<2x8x1xf32>
    %48 = vector.broadcast %47 : vector<2x8x1xf32> to vector<2x8x8xf32>
    %49 = arith.mulf %44, %48 : vector<2x8x8xf32>
    "tpu.trace_start"() <{level = 10 : i32, message = "bqk,bkd->bqd"}> : () -> ()
    %cst_23 = arith.constant dense<0.000000e+00> : vector<2x8x8xf32>
    %50 = tpu.matmul %49, %32, %cst_23 {dimension_numbers = #tpu.dot_dimension_numbers<[2], [1], [1], [2], [0, 0, 0, 1, 1, 2], [0], [0]>} : vector<2x8x8xf32>, vector<2x8x8xf32>, vector<2x8x8xf32> -> vector<2x8x8xf32>
    "tpu.trace_stop"() : () -> ()
    %51 = vector.shape_cast %50 : vector<2x8x8xf32> to vector<16x8xf32>
    %c0_24 = arith.constant 0 : index
    %c0_25 = arith.constant 0 : index
    %c0_26 = arith.constant 0 : index
    %52 = vector.load %arg6[%c0_24, %c0_25, %c0_26] : memref<4x8x32xf32, #tpu.memory_space<vmem>>, vector<1x8x32xf32>
    %53 = vector.shape_cast %52 : vector<1x8x32xf32> to vector<8x32xf32>
    %cst_27 = arith.constant dense<0.000000e+00> : vector<16x32xf32>
    %54 = tpu.matmul %51, %53, %cst_27 {dimension_numbers = #tpu.dot_dimension_numbers<[1], [0], [0], [1], [0, 0, 1, 1], [], []>} : vector<16x8xf32>, vector<8x32xf32>, vector<16x32xf32> -> vector<16x32xf32>
    %c1 = arith.constant 1 : index
    %c0_28 = arith.constant 0 : index
    %c0_29 = arith.constant 0 : index
    %55 = vector.load %arg5[%c1, %c0_28, %c0_29] : memref<4x32x8xf32, #tpu.memory_space<vmem>>, vector<1x32x8xf32>
    %56 = vector.shape_cast %55 : vector<1x32x8xf32> to vector<32x8xf32>
    %cst_30 = arith.constant dense<0.000000e+00> : vector<16x8xf32>
    %57 = tpu.matmul %28, %56, %cst_30 {dimension_numbers = #tpu.dot_dimension_numbers<[1], [0], [0], [1], [0, 0, 1, 1], [], []>} : vector<16x32xf32>, vector<32x8xf32>, vector<16x8xf32> -> vector<16x8xf32>
    %58 = vector.shape_cast %57 : vector<16x8xf32> to vector<2x8x8xf32>
    "tpu.trace_start"() <{level = 10 : i32, message = "bqd,bkd->bqk"}> : () -> ()
    %cst_31 = arith.constant dense<0.000000e+00> : vector<2x8x8xf32>
    %59 = tpu.matmul %58, %58, %cst_31 {dimension_numbers = #tpu.dot_dimension_numbers<[2], [2], [1], [1], [0, 0, 0, 1, 1, 1], [0], [0]>} : vector<2x8x8xf32>, vector<2x8x8xf32>, vector<2x8x8xf32> -> vector<2x8x8xf32>
    %cst_32 = arith.constant 5.000000e-01 : f32
    "tpu.trace_stop"() : () -> ()
    %60 = vector.broadcast %cst_32 : f32 to vector<2x8x8xf32>
    %61 = arith.cmpf ogt, %27, %60 : vector<2x8x8xf32>
    %cst_33 = arith.constant -1.000000e+30 : f32
    %62 = vector.broadcast %cst_33 : f32 to vector<2x8x8xf32>
    %63 = arith.select %61, %62, %59 : vector<2x8x8xi1>, vector<2x8x8xf32>
    %cst_34 = arith.constant 0.353553385 : f32
    %64 = vector.broadcast %cst_34 : f32 to vector<2x8x8xf32>
    %65 = arith.mulf %63, %64 : vector<2x8x8xf32>
    %cst_35 = arith.constant dense<0xFF800000> : vector<2x8xf32>
    %66 = vector.multi_reduction <maximumf>, %65, %cst_35 [2] : vector<2x8x8xf32> to vector<2x8xf32>
    %67 = vector.shape_cast %66 : vector<2x8xf32> to vector<2x8x1xf32>
    %68 = vector.broadcast %67 : vector<2x8x1xf32> to vector<2x8x8xf32>
    %69 = arith.subf %65, %68 : vector<2x8x8xf32>
    %70 = math.exp %69 : vector<2x8x8xf32>
    %cst_36 = arith.constant dense<0.000000e+00> : vector<2x8xf32>
    %71 = vector.multi_reduction <add>, %70, %cst_36 [2] : vector<2x8x8xf32> to vector<2x8xf32>
    %72 = vector.shape_cast %71 : vector<2x8xf32> to vector<2x8x1xf32>
    %73 = tpu.reciprocal %72 {approx = true} : vector<2x8x1xf32> -> vector<2x8x1xf32>
    %74 = vector.broadcast %73 : vector<2x8x1xf32> to vector<2x8x8xf32>
    %75 = arith.mulf %70, %74 : vector<2x8x8xf32>
    "tpu.trace_start"() <{level = 10 : i32, message = "bqk,bkd->bqd"}> : () -> ()
    %cst_37 = arith.constant dense<0.000000e+00> : vector<2x8x8xf32>
    %76 = tpu.matmul %75, %58, %cst_37 {dimension_numbers = #tpu.dot_dimension_numbers<[2], [1], [1], [2], [0, 0, 0, 1, 1, 2], [0], [0]>} : vector<2x8x8xf32>, vector<2x8x8xf32>, vector<2x8x8xf32> -> vector<2x8x8xf32>
    "tpu.trace_stop"() : () -> ()
    %77 = vector.shape_cast %76 : vector<2x8x8xf32> to vector<16x8xf32>
    %c1_38 = arith.constant 1 : index
    %c0_39 = arith.constant 0 : index
    %c0_40 = arith.constant 0 : index
    %78 = vector.load %arg6[%c1_38, %c0_39, %c0_40] : memref<4x8x32xf32, #tpu.memory_space<vmem>>, vector<1x8x32xf32>
    %79 = vector.shape_cast %78 : vector<1x8x32xf32> to vector<8x32xf32>
    %cst_41 = arith.constant dense<0.000000e+00> : vector<16x32xf32>
    %80 = tpu.matmul %77, %79, %cst_41 {dimension_numbers = #tpu.dot_dimension_numbers<[1], [0], [0], [1], [0, 0, 1, 1], [], []>} : vector<16x8xf32>, vector<8x32xf32>, vector<16x32xf32> -> vector<16x32xf32>
    %81 = arith.addf %54, %80 : vector<16x32xf32>
    %c2 = arith.constant 2 : index
    %c0_42 = arith.constant 0 : index
    %c0_43 = arith.constant 0 : index
    %82 = vector.load %arg5[%c2, %c0_42, %c0_43] : memref<4x32x8xf32, #tpu.memory_space<vmem>>, vector<1x32x8xf32>
    %83 = vector.shape_cast %82 : vector<1x32x8xf32> to vector<32x8xf32>
    %cst_44 = arith.constant dense<0.000000e+00> : vector<16x8xf32>
    %84 = tpu.matmul %28, %83, %cst_44 {dimension_numbers = #tpu.dot_dimension_numbers<[1], [0], [0], [1], [0, 0, 1, 1], [], []>} : vector<16x32xf32>, vector<32x8xf32>, vector<16x8xf32> -> vector<16x8xf32>
    %85 = vector.shape_cast %84 : vector<16x8xf32> to vector<2x8x8xf32>
    "tpu.trace_start"() <{level = 10 : i32, message = "bqd,bkd->bqk"}> : () -> ()
    %cst_45 = arith.constant dense<0.000000e+00> : vector<2x8x8xf32>
    %86 = tpu.matmul %85, %85, %cst_45 {dimension_numbers = #tpu.dot_dimension_numbers<[2], [2], [1], [1], [0, 0, 0, 1, 1, 1], [0], [0]>} : vector<2x8x8xf32>, vector<2x8x8xf32>, vector<2x8x8xf32> -> vector<2x8x8xf32>
    %cst_46 = arith.constant 5.000000e-01 : f32
    "tpu.trace_stop"() : () -> ()
    %87 = vector.broadcast %cst_46 : f32 to vector<2x8x8xf32>
    %88 = arith.cmpf ogt, %27, %87 : vector<2x8x8xf32>
    %cst_47 = arith.constant -1.000000e+30 : f32
    %89 = vector.broadcast %cst_47 : f32 to vector<2x8x8xf32>
    %90 = arith.select %88, %89, %86 : vector<2x8x8xi1>, vector<2x8x8xf32>
    %cst_48 = arith.constant 0.353553385 : f32
    %91 = vector.broadcast %cst_48 : f32 to vector<2x8x8xf32>
    %92 = arith.mulf %90, %91 : vector<2x8x8xf32>
    %cst_49 = arith.constant dense<0xFF800000> : vector<2x8xf32>
    %93 = vector.multi_reduction <maximumf>, %92, %cst_49 [2] : vector<2x8x8xf32> to vector<2x8xf32>
    %94 = vector.shape_cast %93 : vector<2x8xf32> to vector<2x8x1xf32>
    %95 = vector.broadcast %94 : vector<2x8x1xf32> to vector<2x8x8xf32>
    %96 = arith.subf %92, %95 : vector<2x8x8xf32>
    %97 = math.exp %96 : vector<2x8x8xf32>
    %cst_50 = arith.constant dense<0.000000e+00> : vector<2x8xf32>
    %98 = vector.multi_reduction <add>, %97, %cst_50 [2] : vector<2x8x8xf32> to vector<2x8xf32>
    %99 = vector.shape_cast %98 : vector<2x8xf32> to vector<2x8x1xf32>
    %100 = tpu.reciprocal %99 {approx = true} : vector<2x8x1xf32> -> vector<2x8x1xf32>
    %101 = vector.broadcast %100 : vector<2x8x1xf32> to vector<2x8x8xf32>
    %102 = arith.mulf %97, %101 : vector<2x8x8xf32>
    "tpu.trace_start"() <{level = 10 : i32, message = "bqk,bkd->bqd"}> : () -> ()
    %cst_51 = arith.constant dense<0.000000e+00> : vector<2x8x8xf32>
    %103 = tpu.matmul %102, %85, %cst_51 {dimension_numbers = #tpu.dot_dimension_numbers<[2], [1], [1], [2], [0, 0, 0, 1, 1, 2], [0], [0]>} : vector<2x8x8xf32>, vector<2x8x8xf32>, vector<2x8x8xf32> -> vector<2x8x8xf32>
    "tpu.trace_stop"() : () -> ()
    %104 = vector.shape_cast %103 : vector<2x8x8xf32> to vector<16x8xf32>
    %c2_52 = arith.constant 2 : index
    %c0_53 = arith.constant 0 : index
    %c0_54 = arith.constant 0 : index
    %105 = vector.load %arg6[%c2_52, %c0_53, %c0_54] : memref<4x8x32xf32, #tpu.memory_space<vmem>>, vector<1x8x32xf32>
    %106 = vector.shape_cast %105 : vector<1x8x32xf32> to vector<8x32xf32>
    %cst_55 = arith.constant dense<0.000000e+00> : vector<16x32xf32>
    %107 = tpu.matmul %104, %106, %cst_55 {dimension_numbers = #tpu.dot_dimension_numbers<[1], [0], [0], [1], [0, 0, 1, 1], [], []>} : vector<16x8xf32>, vector<8x32xf32>, vector<16x32xf32> -> vector<16x32xf32>
    %108 = arith.addf %81, %107 : vector<16x32xf32>
    %c3 = arith.constant 3 : index
    %c0_56 = arith.constant 0 : index
    %c0_57 = arith.constant 0 : index
    %109 = vector.load %arg5[%c3, %c0_56, %c0_57] : memref<4x32x8xf32, #tpu.memory_space<vmem>>, vector<1x32x8xf32>
    %110 = vector.shape_cast %109 : vector<1x32x8xf32> to vector<32x8xf32>
    %cst_58 = arith.constant dense<0.000000e+00> : vector<16x8xf32>
    %111 = tpu.matmul %28, %110, %cst_58 {dimension_numbers = #tpu.dot_dimension_numbers<[1], [0], [0], [1], [0, 0, 1, 1], [], []>} : vector<16x32xf32>, vector<32x8xf32>, vector<16x8xf32> -> vector<16x8xf32>
    %112 = vector.shape_cast %111 : vector<16x8xf32> to vector<2x8x8xf32>
    "tpu.trace_start"() <{level = 10 : i32, message = "bqd,bkd->bqk"}> : () -> ()
    %cst_59 = arith.constant dense<0.000000e+00> : vector<2x8x8xf32>
    %113 = tpu.matmul %112, %112, %cst_59 {dimension_numbers = #tpu.dot_dimension_numbers<[2], [2], [1], [1], [0, 0, 0, 1, 1, 1], [0], [0]>} : vector<2x8x8xf32>, vector<2x8x8xf32>, vector<2x8x8xf32> -> vector<2x8x8xf32>
    %cst_60 = arith.constant 5.000000e-01 : f32
    "tpu.trace_stop"() : () -> ()
    %114 = vector.broadcast %cst_60 : f32 to vector<2x8x8xf32>
    %115 = arith.cmpf ogt, %27, %114 : vector<2x8x8xf32>
    %cst_61 = arith.constant -1.000000e+30 : f32
    %116 = vector.broadcast %cst_61 : f32 to vector<2x8x8xf32>
    %117 = arith.select %115, %116, %113 : vector<2x8x8xi1>, vector<2x8x8xf32>
    %cst_62 = arith.constant 0.353553385 : f32
    %118 = vector.broadcast %cst_62 : f32 to vector<2x8x8xf32>
    %119 = arith.mulf %117, %118 : vector<2x8x8xf32>
    %cst_63 = arith.constant dense<0xFF800000> : vector<2x8xf32>
    %120 = vector.multi_reduction <maximumf>, %119, %cst_63 [2] : vector<2x8x8xf32> to vector<2x8xf32>
    %121 = vector.shape_cast %120 : vector<2x8xf32> to vector<2x8x1xf32>
    %122 = vector.broadcast %121 : vector<2x8x1xf32> to vector<2x8x8xf32>
    %123 = arith.subf %119, %122 : vector<2x8x8xf32>
    %124 = math.exp %123 : vector<2x8x8xf32>
    %cst_64 = arith.constant dense<0.000000e+00> : vector<2x8xf32>
    %125 = vector.multi_reduction <add>, %124, %cst_64 [2] : vector<2x8x8xf32> to vector<2x8xf32>
    %126 = vector.shape_cast %125 : vector<2x8xf32> to vector<2x8x1xf32>
    %127 = tpu.reciprocal %126 {approx = true} : vector<2x8x1xf32> -> vector<2x8x1xf32>
    %128 = vector.broadcast %127 : vector<2x8x1xf32> to vector<2x8x8xf32>
    %129 = arith.mulf %124, %128 : vector<2x8x8xf32>
    "tpu.trace_start"() <{level = 10 : i32, message = "bqk,bkd->bqd"}> : () -> ()
    %cst_65 = arith.constant dense<0.000000e+00> : vector<2x8x8xf32>
    %130 = tpu.matmul %129, %112, %cst_65 {dimension_numbers = #tpu.dot_dimension_numbers<[2], [1], [1], [2], [0, 0, 0, 1, 1, 2], [0], [0]>} : vector<2x8x8xf32>, vector<2x8x8xf32>, vector<2x8x8xf32> -> vector<2x8x8xf32>
    "tpu.trace_stop"() : () -> ()
    %131 = vector.shape_cast %130 : vector<2x8x8xf32> to vector<16x8xf32>
    %c3_66 = arith.constant 3 : index
    %c0_67 = arith.constant 0 : index
    %c0_68 = arith.constant 0 : index
    %132 = vector.load %arg6[%c3_66, %c0_67, %c0_68] : memref<4x8x32xf32, #tpu.memory_space<vmem>>, vector<1x8x32xf32>
    %133 = vector.shape_cast %132 : vector<1x8x32xf32> to vector<8x32xf32>
    %cst_69 = arith.constant dense<0.000000e+00> : vector<16x32xf32>
    %134 = tpu.matmul %131, %133, %cst_69 {dimension_numbers = #tpu.dot_dimension_numbers<[1], [0], [0], [1], [0, 0, 1, 1], [], []>} : vector<16x8xf32>, vector<8x32xf32>, vector<16x32xf32> -> vector<16x32xf32>
    %135 = arith.addf %108, %134 : vector<16x32xf32>
    %136 = arith.addf %3, %135 : vector<16x32xf32>
    %cst_70 = arith.constant dense<0.000000e+00> : vector<16xf32>
    %137 = vector.multi_reduction <add>, %136, %cst_70 [1] : vector<16x32xf32> to vector<16xf32>
    %138 = vector.shape_cast %137 : vector<16xf32> to vector<16x1xf32>
    %cst_71 = arith.constant 3.200000e+01 : f32
    %139 = vector.broadcast %cst_71 : f32 to vector<16x1xf32>
    %140 = arith.divf %138, %139 : vector<16x1xf32>
    %141 = vector.broadcast %140 : vector<16x1xf32> to vector<16x32xf32>
    %142 = arith.subf %136, %141 : vector<16x32xf32>
    %143 = arith.mulf %142, %142 : vector<16x32xf32>
    %cst_72 = arith.constant dense<0.000000e+00> : vector<16xf32>
    %144 = vector.multi_reduction <add>, %143, %cst_72 [1] : vector<16x32xf32> to vector<16xf32>
    %145 = vector.shape_cast %144 : vector<16xf32> to vector<16x1xf32>
    %cst_73 = arith.constant 3.200000e+01 : f32
    %146 = vector.broadcast %cst_73 : f32 to vector<16x1xf32>
    %147 = arith.divf %145, %146 : vector<16x1xf32>
    %148 = vector.broadcast %140 : vector<16x1xf32> to vector<16x32xf32>
    %149 = arith.subf %136, %148 : vector<16x32xf32>
    %cst_74 = arith.constant 9.99999974E-6 : f32
    %150 = vector.broadcast %cst_74 : f32 to vector<16x1xf32>
    %151 = arith.addf %147, %150 : vector<16x1xf32>
    %152 = math.rsqrt %151 : vector<16x1xf32>
    %153 = vector.broadcast %152 : vector<16x1xf32> to vector<16x32xf32>
    %154 = arith.mulf %149, %153 : vector<16x32xf32>
    %155 = vector.broadcast %0 : vector<1x32xf32> to vector<16x32xf32>
    %156 = arith.mulf %154, %155 : vector<16x32xf32>
    %157 = vector.broadcast %1 : vector<1x32xf32> to vector<16x32xf32>
    %158 = arith.addf %156, %157 : vector<16x32xf32>
    %159 = vector.shape_cast %158 : vector<16x32xf32> to vector<2x8x32xf32>
    %c0_75 = arith.constant 0 : index
    %c0_76 = arith.constant 0 : index
    %c0_77 = arith.constant 0 : index
    %160 = vector.load %arg2[%c0_75, %c0_76, %c0_77] : memref<2x8x32xf32, #tpu.memory_space<vmem>>, vector<2x8x32xf32>
    %161 = vector.shape_cast %160 : vector<2x8x32xf32> to vector<16x32xf32>
    %cst_78 = arith.constant dense<0.000000e+00> : vector<16xf32>
    %162 = vector.multi_reduction <add>, %161, %cst_78 [1] : vector<16x32xf32> to vector<16xf32>
    %163 = vector.shape_cast %162 : vector<16xf32> to vector<16x1xf32>
    %cst_79 = arith.constant 3.200000e+01 : f32
    %164 = vector.broadcast %cst_79 : f32 to vector<16x1xf32>
    %165 = arith.divf %163, %164 : vector<16x1xf32>
    %166 = vector.broadcast %165 : vector<16x1xf32> to vector<16x32xf32>
    %167 = arith.subf %161, %166 : vector<16x32xf32>
    %168 = arith.mulf %167, %167 : vector<16x32xf32>
    %cst_80 = arith.constant dense<0.000000e+00> : vector<16xf32>
    %169 = vector.multi_reduction <add>, %168, %cst_80 [1] : vector<16x32xf32> to vector<16xf32>
    %170 = vector.shape_cast %169 : vector<16xf32> to vector<16x1xf32>
    %cst_81 = arith.constant 3.200000e+01 : f32
    %171 = vector.broadcast %cst_81 : f32 to vector<16x1xf32>
    %172 = arith.divf %170, %171 : vector<16x1xf32>
    %173 = vector.broadcast %165 : vector<16x1xf32> to vector<16x32xf32>
    %174 = arith.subf %161, %173 : vector<16x32xf32>
    %cst_82 = arith.constant 9.99999974E-6 : f32
    %175 = vector.broadcast %cst_82 : f32 to vector<16x1xf32>
    %176 = arith.addf %172, %175 : vector<16x1xf32>
    %177 = math.rsqrt %176 : vector<16x1xf32>
    %178 = vector.broadcast %177 : vector<16x1xf32> to vector<16x32xf32>
    %179 = arith.mulf %174, %178 : vector<16x32xf32>
    %180 = vector.broadcast %0 : vector<1x32xf32> to vector<16x32xf32>
    %181 = arith.mulf %179, %180 : vector<16x32xf32>
    %182 = vector.broadcast %1 : vector<1x32xf32> to vector<16x32xf32>
    %183 = arith.addf %181, %182 : vector<16x32xf32>
    %184 = vector.shape_cast %183 : vector<16x32xf32> to vector<2x8x32xf32>
    %c0_83 = arith.constant 0 : index
    %c0_84 = arith.constant 0 : index
    %c0_85 = arith.constant 0 : index
    %185 = vector.load %arg4[%c0_83, %c0_84, %c0_85] : memref<2x8x8xf32, #tpu.memory_space<vmem>>, vector<2x8x8xf32>
    %186 = vector.shape_cast %159 : vector<2x8x32xf32> to vector<16x32xf32>
    %187 = vector.shape_cast %184 : vector<2x8x32xf32> to vector<16x32xf32>
    %c0_86 = arith.constant 0 : index
    %c0_87 = arith.constant 0 : index
    %c0_88 = arith.constant 0 : index
    %188 = vector.load %arg7[%c0_86, %c0_87, %c0_88] : memref<4x32x8xf32, #tpu.memory_space<vmem>>, vector<1x32x8xf32>
    %189 = vector.shape_cast %188 : vector<1x32x8xf32> to vector<32x8xf32>
    %cst_89 = arith.constant dense<0.000000e+00> : vector<16x8xf32>
    %190 = tpu.matmul %186, %189, %cst_89 {dimension_numbers = #tpu.dot_dimension_numbers<[1], [0], [0], [1], [0, 0, 1, 1], [], []>} : vector<16x32xf32>, vector<32x8xf32>, vector<16x8xf32> -> vector<16x8xf32>
    %191 = vector.shape_cast %190 : vector<16x8xf32> to vector<2x8x8xf32>
    %cst_90 = arith.constant dense<0.000000e+00> : vector<16x8xf32>
    %192 = tpu.matmul %187, %189, %cst_90 {dimension_numbers = #tpu.dot_dimension_numbers<[1], [0], [0], [1], [0, 0, 1, 1], [], []>} : vector<16x32xf32>, vector<32x8xf32>, vector<16x8xf32> -> vector<16x8xf32>
    %193 = vector.shape_cast %192 : vector<16x8xf32> to vector<2x8x8xf32>
    "tpu.trace_start"() <{level = 10 : i32, message = "bqd,bkd->bqk"}> : () -> ()
    %cst_91 = arith.constant dense<0.000000e+00> : vector<2x8x8xf32>
    %194 = tpu.matmul %191, %193, %cst_91 {dimension_numbers = #tpu.dot_dimension_numbers<[2], [2], [1], [1], [0, 0, 0, 1, 1, 1], [0], [0]>} : vector<2x8x8xf32>, vector<2x8x8xf32>, vector<2x8x8xf32> -> vector<2x8x8xf32>
    %cst_92 = arith.constant 5.000000e-01 : f32
    "tpu.trace_stop"() : () -> ()
    %195 = vector.broadcast %cst_92 : f32 to vector<2x8x8xf32>
    %196 = arith.cmpf ogt, %185, %195 : vector<2x8x8xf32>
    %cst_93 = arith.constant -1.000000e+30 : f32
    %197 = vector.broadcast %cst_93 : f32 to vector<2x8x8xf32>
    %198 = arith.select %196, %197, %194 : vector<2x8x8xi1>, vector<2x8x8xf32>
    %cst_94 = arith.constant 0.353553385 : f32
    %199 = vector.broadcast %cst_94 : f32 to vector<2x8x8xf32>
    %200 = arith.mulf %198, %199 : vector<2x8x8xf32>
    %cst_95 = arith.constant dense<0xFF800000> : vector<2x8xf32>
    %201 = vector.multi_reduction <maximumf>, %200, %cst_95 [2] : vector<2x8x8xf32> to vector<2x8xf32>
    %202 = vector.shape_cast %201 : vector<2x8xf32> to vector<2x8x1xf32>
    %203 = vector.broadcast %202 : vector<2x8x1xf32> to vector<2x8x8xf32>
    %204 = arith.subf %200, %203 : vector<2x8x8xf32>
    %205 = math.exp %204 : vector<2x8x8xf32>
    %cst_96 = arith.constant dense<0.000000e+00> : vector<2x8xf32>
    %206 = vector.multi_reduction <add>, %205, %cst_96 [2] : vector<2x8x8xf32> to vector<2x8xf32>
    %207 = vector.shape_cast %206 : vector<2x8xf32> to vector<2x8x1xf32>
    %208 = tpu.reciprocal %207 {approx = true} : vector<2x8x1xf32> -> vector<2x8x1xf32>
    %209 = vector.broadcast %208 : vector<2x8x1xf32> to vector<2x8x8xf32>
    %210 = arith.mulf %205, %209 : vector<2x8x8xf32>
    "tpu.trace_start"() <{level = 10 : i32, message = "bqk,bkd->bqd"}> : () -> ()
    %cst_97 = arith.constant dense<0.000000e+00> : vector<2x8x8xf32>
    %211 = tpu.matmul %210, %193, %cst_97 {dimension_numbers = #tpu.dot_dimension_numbers<[2], [1], [1], [2], [0, 0, 0, 1, 1, 2], [0], [0]>} : vector<2x8x8xf32>, vector<2x8x8xf32>, vector<2x8x8xf32> -> vector<2x8x8xf32>
    "tpu.trace_stop"() : () -> ()
    %212 = vector.shape_cast %211 : vector<2x8x8xf32> to vector<16x8xf32>
    %c0_98 = arith.constant 0 : index
    %c0_99 = arith.constant 0 : index
    %c0_100 = arith.constant 0 : index
    %213 = vector.load %arg8[%c0_98, %c0_99, %c0_100] : memref<4x8x32xf32, #tpu.memory_space<vmem>>, vector<1x8x32xf32>
    %214 = vector.shape_cast %213 : vector<1x8x32xf32> to vector<8x32xf32>
    %cst_101 = arith.constant dense<0.000000e+00> : vector<16x32xf32>
    %215 = tpu.matmul %212, %214, %cst_101 {dimension_numbers = #tpu.dot_dimension_numbers<[1], [0], [0], [1], [0, 0, 1, 1], [], []>} : vector<16x8xf32>, vector<8x32xf32>, vector<16x32xf32> -> vector<16x32xf32>
    %c1_102 = arith.constant 1 : index
    %c0_103 = arith.constant 0 : index
    %c0_104 = arith.constant 0 : index
    %216 = vector.load %arg7[%c1_102, %c0_103, %c0_104] : memref<4x32x8xf32, #tpu.memory_space<vmem>>, vector<1x32x8xf32>
    %217 = vector.shape_cast %216 : vector<1x32x8xf32> to vector<32x8xf32>
    %cst_105 = arith.constant dense<0.000000e+00> : vector<16x8xf32>
    %218 = tpu.matmul %186, %217, %cst_105 {dimension_numbers = #tpu.dot_dimension_numbers<[1], [0], [0], [1], [0, 0, 1, 1], [], []>} : vector<16x32xf32>, vector<32x8xf32>, vector<16x8xf32> -> vector<16x8xf32>
    %219 = vector.shape_cast %218 : vector<16x8xf32> to vector<2x8x8xf32>
    %cst_106 = arith.constant dense<0.000000e+00> : vector<16x8xf32>
    %220 = tpu.matmul %187, %217, %cst_106 {dimension_numbers = #tpu.dot_dimension_numbers<[1], [0], [0], [1], [0, 0, 1, 1], [], []>} : vector<16x32xf32>, vector<32x8xf32>, vector<16x8xf32> -> vector<16x8xf32>
    %221 = vector.shape_cast %220 : vector<16x8xf32> to vector<2x8x8xf32>
    "tpu.trace_start"() <{level = 10 : i32, message = "bqd,bkd->bqk"}> : () -> ()
    %cst_107 = arith.constant dense<0.000000e+00> : vector<2x8x8xf32>
    %222 = tpu.matmul %219, %221, %cst_107 {dimension_numbers = #tpu.dot_dimension_numbers<[2], [2], [1], [1], [0, 0, 0, 1, 1, 1], [0], [0]>} : vector<2x8x8xf32>, vector<2x8x8xf32>, vector<2x8x8xf32> -> vector<2x8x8xf32>
    %cst_108 = arith.constant 5.000000e-01 : f32
    "tpu.trace_stop"() : () -> ()
    %223 = vector.broadcast %cst_108 : f32 to vector<2x8x8xf32>
    %224 = arith.cmpf ogt, %185, %223 : vector<2x8x8xf32>
    %cst_109 = arith.constant -1.000000e+30 : f32
    %225 = vector.broadcast %cst_109 : f32 to vector<2x8x8xf32>
    %226 = arith.select %224, %225, %222 : vector<2x8x8xi1>, vector<2x8x8xf32>
    %cst_110 = arith.constant 0.353553385 : f32
    %227 = vector.broadcast %cst_110 : f32 to vector<2x8x8xf32>
    %228 = arith.mulf %226, %227 : vector<2x8x8xf32>
    %cst_111 = arith.constant dense<0xFF800000> : vector<2x8xf32>
    %229 = vector.multi_reduction <maximumf>, %228, %cst_111 [2] : vector<2x8x8xf32> to vector<2x8xf32>
    %230 = vector.shape_cast %229 : vector<2x8xf32> to vector<2x8x1xf32>
    %231 = vector.broadcast %230 : vector<2x8x1xf32> to vector<2x8x8xf32>
    %232 = arith.subf %228, %231 : vector<2x8x8xf32>
    %233 = math.exp %232 : vector<2x8x8xf32>
    %cst_112 = arith.constant dense<0.000000e+00> : vector<2x8xf32>
    %234 = vector.multi_reduction <add>, %233, %cst_112 [2] : vector<2x8x8xf32> to vector<2x8xf32>
    %235 = vector.shape_cast %234 : vector<2x8xf32> to vector<2x8x1xf32>
    %236 = tpu.reciprocal %235 {approx = true} : vector<2x8x1xf32> -> vector<2x8x1xf32>
    %237 = vector.broadcast %236 : vector<2x8x1xf32> to vector<2x8x8xf32>
    %238 = arith.mulf %233, %237 : vector<2x8x8xf32>
    "tpu.trace_start"() <{level = 10 : i32, message = "bqk,bkd->bqd"}> : () -> ()
    %cst_113 = arith.constant dense<0.000000e+00> : vector<2x8x8xf32>
    %239 = tpu.matmul %238, %221, %cst_113 {dimension_numbers = #tpu.dot_dimension_numbers<[2], [1], [1], [2], [0, 0, 0, 1, 1, 2], [0], [0]>} : vector<2x8x8xf32>, vector<2x8x8xf32>, vector<2x8x8xf32> -> vector<2x8x8xf32>
    "tpu.trace_stop"() : () -> ()
    %240 = vector.shape_cast %239 : vector<2x8x8xf32> to vector<16x8xf32>
    %c1_114 = arith.constant 1 : index
    %c0_115 = arith.constant 0 : index
    %c0_116 = arith.constant 0 : index
    %241 = vector.load %arg8[%c1_114, %c0_115, %c0_116] : memref<4x8x32xf32, #tpu.memory_space<vmem>>, vector<1x8x32xf32>
    %242 = vector.shape_cast %241 : vector<1x8x32xf32> to vector<8x32xf32>
    %cst_117 = arith.constant dense<0.000000e+00> : vector<16x32xf32>
    %243 = tpu.matmul %240, %242, %cst_117 {dimension_numbers = #tpu.dot_dimension_numbers<[1], [0], [0], [1], [0, 0, 1, 1], [], []>} : vector<16x8xf32>, vector<8x32xf32>, vector<16x32xf32> -> vector<16x32xf32>
    %244 = arith.addf %215, %243 : vector<16x32xf32>
    %c2_118 = arith.constant 2 : index
    %c0_119 = arith.constant 0 : index
    %c0_120 = arith.constant 0 : index
    %245 = vector.load %arg7[%c2_118, %c0_119, %c0_120] : memref<4x32x8xf32, #tpu.memory_space<vmem>>, vector<1x32x8xf32>
    %246 = vector.shape_cast %245 : vector<1x32x8xf32> to vector<32x8xf32>
    %cst_121 = arith.constant dense<0.000000e+00> : vector<16x8xf32>
    %247 = tpu.matmul %186, %246, %cst_121 {dimension_numbers = #tpu.dot_dimension_numbers<[1], [0], [0], [1], [0, 0, 1, 1], [], []>} : vector<16x32xf32>, vector<32x8xf32>, vector<16x8xf32> -> vector<16x8xf32>
    %248 = vector.shape_cast %247 : vector<16x8xf32> to vector<2x8x8xf32>
    %cst_122 = arith.constant dense<0.000000e+00> : vector<16x8xf32>
    %249 = tpu.matmul %187, %246, %cst_122 {dimension_numbers = #tpu.dot_dimension_numbers<[1], [0], [0], [1], [0, 0, 1, 1], [], []>} : vector<16x32xf32>, vector<32x8xf32>, vector<16x8xf32> -> vector<16x8xf32>
    %250 = vector.shape_cast %249 : vector<16x8xf32> to vector<2x8x8xf32>
    "tpu.trace_start"() <{level = 10 : i32, message = "bqd,bkd->bqk"}> : () -> ()
    %cst_123 = arith.constant dense<0.000000e+00> : vector<2x8x8xf32>
    %251 = tpu.matmul %248, %250, %cst_123 {dimension_numbers = #tpu.dot_dimension_numbers<[2], [2], [1], [1], [0, 0, 0, 1, 1, 1], [0], [0]>} : vector<2x8x8xf32>, vector<2x8x8xf32>, vector<2x8x8xf32> -> vector<2x8x8xf32>
    %cst_124 = arith.constant 5.000000e-01 : f32
    "tpu.trace_stop"() : () -> ()
    %252 = vector.broadcast %cst_124 : f32 to vector<2x8x8xf32>
    %253 = arith.cmpf ogt, %185, %252 : vector<2x8x8xf32>
    %cst_125 = arith.constant -1.000000e+30 : f32
    %254 = vector.broadcast %cst_125 : f32 to vector<2x8x8xf32>
    %255 = arith.select %253, %254, %251 : vector<2x8x8xi1>, vector<2x8x8xf32>
    %cst_126 = arith.constant 0.353553385 : f32
    %256 = vector.broadcast %cst_126 : f32 to vector<2x8x8xf32>
    %257 = arith.mulf %255, %256 : vector<2x8x8xf32>
    %cst_127 = arith.constant dense<0xFF800000> : vector<2x8xf32>
    %258 = vector.multi_reduction <maximumf>, %257, %cst_127 [2] : vector<2x8x8xf32> to vector<2x8xf32>
    %259 = vector.shape_cast %258 : vector<2x8xf32> to vector<2x8x1xf32>
    %260 = vector.broadcast %259 : vector<2x8x1xf32> to vector<2x8x8xf32>
    %261 = arith.subf %257, %260 : vector<2x8x8xf32>
    %262 = math.exp %261 : vector<2x8x8xf32>
    %cst_128 = arith.constant dense<0.000000e+00> : vector<2x8xf32>
    %263 = vector.multi_reduction <add>, %262, %cst_128 [2] : vector<2x8x8xf32> to vector<2x8xf32>
    %264 = vector.shape_cast %263 : vector<2x8xf32> to vector<2x8x1xf32>
    %265 = tpu.reciprocal %264 {approx = true} : vector<2x8x1xf32> -> vector<2x8x1xf32>
    %266 = vector.broadcast %265 : vector<2x8x1xf32> to vector<2x8x8xf32>
    %267 = arith.mulf %262, %266 : vector<2x8x8xf32>
    "tpu.trace_start"() <{level = 10 : i32, message = "bqk,bkd->bqd"}> : () -> ()
    %cst_129 = arith.constant dense<0.000000e+00> : vector<2x8x8xf32>
    %268 = tpu.matmul %267, %250, %cst_129 {dimension_numbers = #tpu.dot_dimension_numbers<[2], [1], [1], [2], [0, 0, 0, 1, 1, 2], [0], [0]>} : vector<2x8x8xf32>, vector<2x8x8xf32>, vector<2x8x8xf32> -> vector<2x8x8xf32>
    "tpu.trace_stop"() : () -> ()
    %269 = vector.shape_cast %268 : vector<2x8x8xf32> to vector<16x8xf32>
    %c2_130 = arith.constant 2 : index
    %c0_131 = arith.constant 0 : index
    %c0_132 = arith.constant 0 : index
    %270 = vector.load %arg8[%c2_130, %c0_131, %c0_132] : memref<4x8x32xf32, #tpu.memory_space<vmem>>, vector<1x8x32xf32>
    %271 = vector.shape_cast %270 : vector<1x8x32xf32> to vector<8x32xf32>
    %cst_133 = arith.constant dense<0.000000e+00> : vector<16x32xf32>
    %272 = tpu.matmul %269, %271, %cst_133 {dimension_numbers = #tpu.dot_dimension_numbers<[1], [0], [0], [1], [0, 0, 1, 1], [], []>} : vector<16x8xf32>, vector<8x32xf32>, vector<16x32xf32> -> vector<16x32xf32>
    %273 = arith.addf %244, %272 : vector<16x32xf32>
    %c3_134 = arith.constant 3 : index
    %c0_135 = arith.constant 0 : index
    %c0_136 = arith.constant 0 : index
    %274 = vector.load %arg7[%c3_134, %c0_135, %c0_136] : memref<4x32x8xf32, #tpu.memory_space<vmem>>, vector<1x32x8xf32>
    %275 = vector.shape_cast %274 : vector<1x32x8xf32> to vector<32x8xf32>
    %cst_137 = arith.constant dense<0.000000e+00> : vector<16x8xf32>
    %276 = tpu.matmul %186, %275, %cst_137 {dimension_numbers = #tpu.dot_dimension_numbers<[1], [0], [0], [1], [0, 0, 1, 1], [], []>} : vector<16x32xf32>, vector<32x8xf32>, vector<16x8xf32> -> vector<16x8xf32>
    %277 = vector.shape_cast %276 : vector<16x8xf32> to vector<2x8x8xf32>
    %cst_138 = arith.constant dense<0.000000e+00> : vector<16x8xf32>
    %278 = tpu.matmul %187, %275, %cst_138 {dimension_numbers = #tpu.dot_dimension_numbers<[1], [0], [0], [1], [0, 0, 1, 1], [], []>} : vector<16x32xf32>, vector<32x8xf32>, vector<16x8xf32> -> vector<16x8xf32>
    %279 = vector.shape_cast %278 : vector<16x8xf32> to vector<2x8x8xf32>
    "tpu.trace_start"() <{level = 10 : i32, message = "bqd,bkd->bqk"}> : () -> ()
    %cst_139 = arith.constant dense<0.000000e+00> : vector<2x8x8xf32>
    %280 = tpu.matmul %277, %279, %cst_139 {dimension_numbers = #tpu.dot_dimension_numbers<[2], [2], [1], [1], [0, 0, 0, 1, 1, 1], [0], [0]>} : vector<2x8x8xf32>, vector<2x8x8xf32>, vector<2x8x8xf32> -> vector<2x8x8xf32>
    %cst_140 = arith.constant 5.000000e-01 : f32
    "tpu.trace_stop"() : () -> ()
    %281 = vector.broadcast %cst_140 : f32 to vector<2x8x8xf32>
    %282 = arith.cmpf ogt, %185, %281 : vector<2x8x8xf32>
    %cst_141 = arith.constant -1.000000e+30 : f32
    %283 = vector.broadcast %cst_141 : f32 to vector<2x8x8xf32>
    %284 = arith.select %282, %283, %280 : vector<2x8x8xi1>, vector<2x8x8xf32>
    %cst_142 = arith.constant 0.353553385 : f32
    %285 = vector.broadcast %cst_142 : f32 to vector<2x8x8xf32>
    %286 = arith.mulf %284, %285 : vector<2x8x8xf32>
    %cst_143 = arith.constant dense<0xFF800000> : vector<2x8xf32>
    %287 = vector.multi_reduction <maximumf>, %286, %cst_143 [2] : vector<2x8x8xf32> to vector<2x8xf32>
    %288 = vector.shape_cast %287 : vector<2x8xf32> to vector<2x8x1xf32>
    %289 = vector.broadcast %288 : vector<2x8x1xf32> to vector<2x8x8xf32>
    %290 = arith.subf %286, %289 : vector<2x8x8xf32>
    %291 = math.exp %290 : vector<2x8x8xf32>
    %cst_144 = arith.constant dense<0.000000e+00> : vector<2x8xf32>
    %292 = vector.multi_reduction <add>, %291, %cst_144 [2] : vector<2x8x8xf32> to vector<2x8xf32>
    %293 = vector.shape_cast %292 : vector<2x8xf32> to vector<2x8x1xf32>
    %294 = tpu.reciprocal %293 {approx = true} : vector<2x8x1xf32> -> vector<2x8x1xf32>
    %295 = vector.broadcast %294 : vector<2x8x1xf32> to vector<2x8x8xf32>
    %296 = arith.mulf %291, %295 : vector<2x8x8xf32>
    "tpu.trace_start"() <{level = 10 : i32, message = "bqk,bkd->bqd"}> : () -> ()
    %cst_145 = arith.constant dense<0.000000e+00> : vector<2x8x8xf32>
    %297 = tpu.matmul %296, %279, %cst_145 {dimension_numbers = #tpu.dot_dimension_numbers<[2], [1], [1], [2], [0, 0, 0, 1, 1, 2], [0], [0]>} : vector<2x8x8xf32>, vector<2x8x8xf32>, vector<2x8x8xf32> -> vector<2x8x8xf32>
    "tpu.trace_stop"() : () -> ()
    %298 = vector.shape_cast %297 : vector<2x8x8xf32> to vector<16x8xf32>
    %c3_146 = arith.constant 3 : index
    %c0_147 = arith.constant 0 : index
    %c0_148 = arith.constant 0 : index
    %299 = vector.load %arg8[%c3_146, %c0_147, %c0_148] : memref<4x8x32xf32, #tpu.memory_space<vmem>>, vector<1x8x32xf32>
    %300 = vector.shape_cast %299 : vector<1x8x32xf32> to vector<8x32xf32>
    %cst_149 = arith.constant dense<0.000000e+00> : vector<16x32xf32>
    %301 = tpu.matmul %298, %300, %cst_149 {dimension_numbers = #tpu.dot_dimension_numbers<[1], [0], [0], [1], [0, 0, 1, 1], [], []>} : vector<16x8xf32>, vector<8x32xf32>, vector<16x32xf32> -> vector<16x32xf32>
    %302 = arith.addf %273, %301 : vector<16x32xf32>
    %303 = arith.addf %136, %302 : vector<16x32xf32>
    %cst_150 = arith.constant dense<0.000000e+00> : vector<16xf32>
    %304 = vector.multi_reduction <add>, %303, %cst_150 [1] : vector<16x32xf32> to vector<16xf32>
    %305 = vector.shape_cast %304 : vector<16xf32> to vector<16x1xf32>
    %cst_151 = arith.constant 3.200000e+01 : f32
    %306 = vector.broadcast %cst_151 : f32 to vector<16x1xf32>
    %307 = arith.divf %305, %306 : vector<16x1xf32>
    %308 = vector.broadcast %307 : vector<16x1xf32> to vector<16x32xf32>
    %309 = arith.subf %303, %308 : vector<16x32xf32>
    %310 = arith.mulf %309, %309 : vector<16x32xf32>
    %cst_152 = arith.constant dense<0.000000e+00> : vector<16xf32>
    %311 = vector.multi_reduction <add>, %310, %cst_152 [1] : vector<16x32xf32> to vector<16xf32>
    %312 = vector.shape_cast %311 : vector<16xf32> to vector<16x1xf32>
    %cst_153 = arith.constant 3.200000e+01 : f32
    %313 = vector.broadcast %cst_153 : f32 to vector<16x1xf32>
    %314 = arith.divf %312, %313 : vector<16x1xf32>
    %315 = vector.broadcast %307 : vector<16x1xf32> to vector<16x32xf32>
    %316 = arith.subf %303, %315 : vector<16x32xf32>
    %cst_154 = arith.constant 9.99999974E-6 : f32
    %317 = vector.broadcast %cst_154 : f32 to vector<16x1xf32>
    %318 = arith.addf %314, %317 : vector<16x1xf32>
    %319 = math.rsqrt %318 : vector<16x1xf32>
    %320 = vector.broadcast %319 : vector<16x1xf32> to vector<16x32xf32>
    %321 = arith.mulf %316, %320 : vector<16x32xf32>
    %322 = vector.broadcast %0 : vector<1x32xf32> to vector<16x32xf32>
    %323 = arith.mulf %321, %322 : vector<16x32xf32>
    %324 = vector.broadcast %1 : vector<1x32xf32> to vector<16x32xf32>
    %325 = arith.addf %323, %324 : vector<16x32xf32>
    %c0_155 = arith.constant 0 : index
    %c0_156 = arith.constant 0 : index
    %326 = vector.load %arg11[%c0_155, %c0_156] : memref<32x128xf32, #tpu.memory_space<vmem>>, vector<32x128xf32>
    %cst_157 = arith.constant dense<0.000000e+00> : vector<16x128xf32>
    %327 = tpu.matmul %325, %326, %cst_157 {dimension_numbers = #tpu.dot_dimension_numbers<[1], [0], [0], [1], [0, 0, 1, 1], [], []>} : vector<16x32xf32>, vector<32x128xf32>, vector<16x128xf32> -> vector<16x128xf32>
    %c0_158 = arith.constant 0 : index
    %c0_159 = arith.constant 0 : index
    %328 = vector.load %arg12[%c0_158, %c0_159] : memref<1x128xf32, #tpu.memory_space<vmem>>, vector<1x128xf32>
    %329 = vector.broadcast %328 : vector<1x128xf32> to vector<16x128xf32>
    %330 = arith.addf %327, %329 : vector<16x128xf32>
    %cst_160 = arith.constant 0.000000e+00 : f32
    %331 = vector.broadcast %cst_160 : f32 to vector<16x128xf32>
    %332 = arith.maximumf %330, %331 : vector<16x128xf32>
    %c0_161 = arith.constant 0 : index
    %c0_162 = arith.constant 0 : index
    %333 = vector.load %arg13[%c0_161, %c0_162] : memref<128x32xf32, #tpu.memory_space<vmem>>, vector<128x32xf32>
    %cst_163 = arith.constant dense<0.000000e+00> : vector<16x32xf32>
    %334 = tpu.matmul %332, %333, %cst_163 {dimension_numbers = #tpu.dot_dimension_numbers<[1], [0], [0], [1], [0, 0, 1, 1], [], []>} : vector<16x128xf32>, vector<128x32xf32>, vector<16x32xf32> -> vector<16x32xf32>
    %c0_164 = arith.constant 0 : index
    %c0_165 = arith.constant 0 : index
    %335 = vector.load %arg14[%c0_164, %c0_165] : memref<1x32xf32, #tpu.memory_space<vmem>>, vector<1x32xf32>
    %336 = vector.broadcast %335 : vector<1x32xf32> to vector<16x32xf32>
    %337 = arith.addf %334, %336 : vector<16x32xf32>
    %338 = arith.addf %303, %337 : vector<16x32xf32>
    %339 = vector.shape_cast %338 : vector<16x32xf32> to vector<2x8x32xf32>
    %c0_166 = arith.constant 0 : index
    %c0_167 = arith.constant 0 : index
    %c0_168 = arith.constant 0 : index
    %340 = vector.load %arg15[%c0_166, %c0_167, %c0_168] : memref<2x8x32xf32, #tpu.memory_space<vmem>>, vector<2x8x32xf32>
    tpu.vector_store %arg15[%c0_166, %c0_167, %c0_168], %339 {strides = array<i32>} : memref<2x8x32xf32, #tpu.memory_space<vmem>>, vector<2x8x32xf32>,
    return
  }
}

</mosaic_0001>

<bundles_post_ra>
// kernel: decoder_block.1
= control target key start
LH: loop header
LB: loop body
LE: loop exit
PB: predicated region body
PF: predicated region fallthrough
CT: control target
= control target key end

     0   :  { %vm55_vm0 = vcmask 261120   ;;  %s6123_s0 = inlined_call_operand.vmem [shape: f32[2,8,32], index: 0, kind: input, shape index: {}, may-alias: {0,1}]   ;;  %s6124_s1 = inlined_call_operand.vmem [shape: f32[2,8,32], index: 1, kind: input, shape index: {}, may-alias: {0,1}]   ;;  %s6125_s2 = inlined_call_operand.vmem [shape: f32[2,8,32], index: 2, kind: input, shape index: {}]   ;;  %s6126_s3 = inlined_call_operand.vmem [shape: f32[2,8,8], index: 3, kind: input, shape index: {}]   ;;  %s6127_s4 = inlined_call_operand.vmem [shape: f32[2,8,8], index: 4, kind: input, shape index: {}]   ;;  %s6128_s5 = inlined_call_operand.vmem [shape: f32[4,32,8], index: 5, kind: input, shape index: {}]   ;;  %s6129_s6 = inlined_call_operand.vmem [shape: f32[4,8,32], index: 6, kind: input, shape index: {}]   ;;  %s6130_s7 = inlined_call_operand.vmem [shape: f32[4,32,8], index: 7, kind: input, shape index: {}]   ;;  %s6131_s8 = inlined_call_operand.vmem [shape: f32[4,8,32], index: 8, kind: input, shape index: {}]   ;;  %s6132_s9 = inlined_call_operand.vmem [shape: f32[1,32], index: 9, kind: input, shape index: {}]   ;;  %s6133_s10 = inlined_call_operand.vmem [shape: f32[1,32], index: 10, kind: input, shape index: {}]   ;;  %s6134_s11 = inlined_call_operand.vmem [shape: f32[32,128], index: 11, kind: input, shape index: {}]   ;;  %s6135_s12 = inlined_call_operand.vmem [shape: f32[1,128], index: 12, kind: input, shape index: {}]   ;;  %s6136_s13 = inlined_call_operand.vmem [shape: f32[128,32], index: 13, kind: input, shape index: {}]   ;;  %s6137_s14 = inlined_call_operand.vmem [shape: f32[1,32], index: 14, kind: input, shape index: {}]   ;;  %s6138_s15 = inlined_call_operand.hbm [shape: f32[2,8,32], index: 15, kind: output, shape index: {}]  }
   0x1   :  { %v5493_v0 = vld [vmem:[%s6123_s0] sm:$0xff]  ;;  %v5498_v1 = vld [vmem:[%s6123_s0 + $0x8] sm:$0xff] }
   0x2   :  { %20 = vsyncpa [#allocation3], 0  ;;  %v56_v2 = vsel %vm55_vm0, %v5493_v0, 0.0  ;;  %v59_v3 = vsel %vm55_vm0, %v5498_v1, 0.0  ;;  %v104_v14 = vld [vmem:[%s6128_s5 + $0x18] sm:$0xff]  ;;  %v103_v15 = vld [vmem:[%s6128_s5 + $0x10] sm:$0xff] }
   0x3   :  { %57 = vadd.xlane.f32.xlu0 %v56_v2  ;;  %4918 = vmatprep.subr.mxu0 %v104_v14  ;;  %v102_v16 = vld [vmem:[%s6128_s5 + $0x8] sm:$0xff]  ;;  %v101_v17 = vld [vmem:[%s6128_s5] sm:$0xff]  ;;  %v5405_v34 = vmov 0.0   ;;  %vm5406_vm1 = vmmov 0   ;;  %vm186_vm2 = vcmask 64512   ;;  %v4623_v59 = vld [vmem:[%s6128_s5 + $0x38] sm:$0xff] }
   0x4   :  { %4919 = vmatpush3.msra.mxu0 %v104_v14  ;;  %v5523_v25 = vld [vmem:[%s6132_s9] ss:$0 sm:$0xff]  ;;  %4934 = vmatprep.subr.mxu1 %v5405_v34  ;;  %v5562_v37 = vld [vmem:[%s6126_s3 + $0x8] sm:$0xff]  ;;  %v4622_v2 = vld [vmem:[%s6128_s5 + $0x30] sm:$0xff] }
   0x5   :  { %4920 = vmatprep.subr.mxu0 %v103_v15  ;;  %v5528_v27 = vld [vmem:[%s6133_s10] ss:$0 sm:$0xff]  ;;  %4936 = vmatprep.mubr.msk.f32.mxu1 %vm5406_vm1, %v5405_v34  ;;  %vm334_vm3 = vcmp.gt.f32.partialorder %v5562_v37, 0.5 }
   0x6   :  { %4921 = vmatpush3.msra.mxu0 %v103_v15  ;;  %v5567_v38 = vld [vmem:[%s6126_s3] sm:$0xff] }
   0x7   :  { %60 = vadd.xlane.f32.xlu0 %v59_v3  ;;  %4922 = vmatprep.subr.mxu0 %v102_v16  ;;  %vm333_vm4 = vcmp.gt.f32.partialorder %v5567_v38, 0.5 }
   0x8   :  { %4923 = vmatpush3.msra.mxu0 %v102_v16 }
   0x9   :  { %4924 = vmatprep.subr.mxu0 %v101_v17 }
   0xa   :  { %4925 = vmatpush3.msra.mxu0 %v101_v17 }
   0xb   :  { %4929 = vmatprep.subr.mxu0 %v5405_v34 }
  0x8c   :  { %v58_v4 = vpop.xlane.xlu0 %57 }
  0x8d   :  { %v63_v5 = vmul.f32 0.03125, %v58_v4  ;;  %v4621_v4 = vld [vmem:[%s6128_s5 + $0x28] sm:$0xff] }
  0x8f   :  { %v65_v6 = vsub.f32 %v5493_v0, %v63_v5 }
  0x90   :  { %v61_v7 = vpop.xlane.xlu0 %60 }
  0x91   :  { %v64_v8 = vmul.f32 0.03125, %v61_v7  ;;  %v67_v9 = vmul.f32 %v65_v6, %v65_v6 }
  0x93   :  { %v66_v10 = vsub.f32 %v5498_v1, %v64_v8  ;;  %v69_v11 = vsel %vm55_vm0, %v67_v9, 0.0 }
  0x94   :  { %70 = vadd.xlane.f32.xlu1 %v69_v11 }
  0x95   :  { %v68_v12 = vmul.f32 %v66_v10, %v66_v10 }
  0x97   :  { %v72_v13 = vsel %vm55_vm0, %v68_v12, 0.0 }
  0x98   :  { %73 = vadd.xlane.f32.xlu1 %v72_v13 }
 0x11d   :  { %v71_v18 = vpop.xlane.xlu1 %70 }
 0x11e   :  { %v75_v19 = vmul.f32 0.03125, %v71_v18 }
 0x120   :  { %v77_v20 = vadd.f32 1e-05, %v75_v19 }
 0x121   :  { %v74_v21 = vpop.xlane.xlu1 %73 }
 0x122   :  { %5301 = vrsqrt.f32 %v77_v20  ;;  %v76_v22 = vmul.f32 0.03125, %v74_v21 }
 0x124   :  { %v78_v23 = vadd.f32 1e-05, %v76_v22 }
 0x126   :  { %5303 = vrsqrt.f32 %v78_v23 }
 0x12f   :  { %v5302_v24 = vpop.eup %5301 }
 0x130   :  { %v81_v26 = vmul.f32 %v5302_v24, %v65_v6  ;;  %v4620_v6 = vld [vmem:[%s6128_s5 + $0x20] sm:$0xff] }
 0x132   :  { %v89_v28 = vmul.f32 %v5523_v25, %v81_v26 }
 0x133   :  { %v5304_v29 = vpop.eup %5303 }
 0x134   :  { %v5532_v30 = vadd.f32 %v5528_v27, %v89_v28  ;;  %v82_v31 = vmul.f32 %v5304_v29, %v66_v10 }
 0x136   :  { %4926 = vmatprep.mubr.msk.f32.mxu0 %vm55_vm0, %v5532_v30  ;;  %v90_v32 = vmul.f32 %v5523_v25, %v82_v31 }
 0x138   :  { %v5538_v33 = vadd.f32 %v5528_v27, %v90_v32 }
 0x13a   :  { %4927 = vmatmul.mubr.msk.f32.vlgmr.msra.gmra.mxu0 %vm55_vm0, %v5538_v33 }
 0x13b   :  { %4931 = vmatprep.mubr.msk.f32.mxu0 %vm5406_vm1, %v5405_v34 }
 0x1fa   :  { %v4928_v35 = vpop.f32.mrf.mxu0 }
 0x1fb   :  { %4935 = vmatpush3.xpose.msk.msra.mxu1 %vm186_vm2, %v4928_v35 }
 0x1fc   :  { %v177_v36 = vpop.f32.mrf.mxu0  ;;  %4944 = vmatprep.subr.mxu1 %v5405_v34 }
 0x1fd   :  { %4930 = vmatpush3.xpose.msk.msra.mxu0 %vm186_vm2, %v177_v36 }
 0x1fe   :  { %4937 = vmatmul.mubr.msk.f32.vlgmr.msra.gmra.mxu1 %vm186_vm2, %v4928_v35  ;;  %4939 = vmatprep.subr.mxu0 %v5405_v34 }
 0x1ff   :  { %4945 = vmatpush3.msra.mxu1 %v4928_v35  ;;  %4946 = vmatprep.mubr.msk.f32.mxu1 %vm5406_vm1, %v5405_v34 }
 0x200   :  { %4932 = vmatmul.mubr.msk.f32.vlgmr.msra.gmra.mxu0 %vm186_vm2, %v177_v36  ;;  %4960 = vmatprep.subr.mxu1 %v5405_v34 }
 0x201   :  { %4940 = vmatpush3.msra.mxu0 %v177_v36  ;;  %4941 = vmatprep.mubr.msk.f32.mxu0 %vm5406_vm1, %v5405_v34 }
 0x202   :  { %4949 = vmatprep.subr.mxu0 %v4623_v59 }
 0x2be   :  { %v329_v39 = vpop.f32.mrf.mxu1 }
 0x2bf   :  { %v336_v42 = vsel %vm334_vm3, -1e+30, %v329_v39 }
 0x2c0   :  { %v256_v40 = vpop.f32.mrf.mxu0  ;;  %v4938_v41 = vpop.f32.mrf.mxu1  ;;  %v338_v46 = vmul.f32 0.35355338, %v336_v42 }
 0x2c1   :  { %v335_v43 = vsel %vm333_vm4, -1e+30, %v256_v40  ;;  %v507_v40 = vld [vmem:[%s6129_s6] sm:$0xff] }
 0x2c2   :  { %v337_v44 = vmul.f32 0.35355338, %v335_v43  ;;  %v4933_v45 = vpop.f32.mrf.mxu0  ;;  %v342_v48 = vsel %vm186_vm2, %v338_v46, -inf }
 0x2c4   :  { %v339_v47 = vsel %vm186_vm2, %v337_v44, -inf }
 0x2c5   :  { %340 = vmax.xlane.f32.xlu0 %v339_v47  ;;  %v4632_v47 = vld [vmem:[%s6129_s6 + $0x8] sm:$0xff] }
 0x2c9   :  { %343 = vmax.xlane.f32.xlu0 %v342_v48  ;;  %v4640_v48 = vld [vmem:[%s6128_s5 + $0x58] sm:$0xff] }
 0x34e   :  { %v341_v49 = vpop.xlane.xlu0 %340 }
 0x34f   :  { %v345_v50 = vsub.f32 %v337_v44, %v341_v49 }
 0x351   :  { %v347_v51 = vmul.f32 1.442695, %v345_v50 }
 0x352   :  { %v344_v52 = vpop.xlane.xlu0 %343 }
 0x353   :  { %5305 = vpow2.f32 %v347_v51  ;;  %v346_v53 = vsub.f32 %v338_v46, %v344_v52  ;;  %v4639_v52 = vld [vmem:[%s6128_s5 + $0x50] sm:$0xff] }
 0x355   :  { %v349_v54 = vmul.f32 1.442695, %v346_v53 }
 0x357   :  { %5307 = vpow2.f32 %v349_v54  ;;  %v4638_v54 = vld [vmem:[%s6128_s5 + $0x48] sm:$0xff] }
 0x360   :  { %v5306_v55 = vpop.eup %5305 }
 0x361   :  { %v351_v56 = vsel %vm186_vm2, %v5306_v55, 0.0 }
 0x362   :  { %352 = vadd.xlane.f32.xlu1 %v351_v56 }
 0x364   :  { %v5308_v57 = vpop.eup %5307 }
 0x365   :  { %v354_v58 = vsel %vm186_vm2, %v5308_v57, 0.0 }
 0x366   :  { %355 = vadd.xlane.f32.xlu1 %v354_v58 }
 0x3eb   :  { %v353_v60 = vpop.xlane.xlu1 %352 }
 0x3ec   :  { %5309 = vrcp.f32 %v353_v60 }
 0x3ef   :  { %v356_v61 = vpop.xlane.xlu1 %355 }
 0x3f0   :  { %5311 = vrcp.f32 %v356_v61 }
 0x3f9   :  { %v5310_v62 = vpop.eup %5309 }
 0x3fa   :  { %v359_v63 = vmul.f32 %v5310_v62, %v5306_v55  ;;  %v4637_v55 = vld [vmem:[%s6128_s5 + $0x40] sm:$0xff] }
 0x3fc   :  { %4942 = vmatmul.mubr.msk.f32.vlgmr.msra.gmra.mxu0 %vm186_vm2, %v359_v63 }
 0x3fd   :  { %v5312_v3 = vpop.eup %5311  ;;  %4950 = vmatpush3.msra.mxu0 %v4623_v59  ;;  %4957 = vmatprep.mubr.msk.f32.mxu0 %vm55_vm0, %v5532_v30 }
 0x3fe   :  { %4951 = vmatprep.subr.mxu0 %v4622_v2  ;;  %v360_v5 = vmul.f32 %v5312_v3, %v5308_v57 }
 0x3ff   :  { %4952 = vmatpush3.msra.mxu0 %v4622_v2 }
 0x400   :  { %4953 = vmatprep.subr.mxu0 %v4621_v4  ;;  %4947 = vmatmul.mubr.msk.f32.vlgmr.msra.gmra.mxu1 %vm186_vm2, %v360_v5 }
 0x401   :  { %4954 = vmatpush3.msra.mxu0 %v4621_v4  ;;  %4962 = vmatprep.mubr.msk.f32.mxu1 %vm5406_vm1, %v5405_v34 }
 0x402   :  { %4955 = vmatprep.subr.mxu0 %v4620_v6 }
 0x403   :  { %4956 = vmatpush3.msra.mxu0 %v4620_v6 }
 0x404   :  { %4958 = vmatmul.mubr.msk.f32.vlgmr.msra.gmra.mxu0 %vm55_vm0, %v5538_v33  ;;  %4970 = vmatprep.subr.mxu0 %v5405_v34 }
 0x405   :  { %4972 = vmatprep.mubr.msk.f32.mxu0 %vm5406_vm1, %v5405_v34 }
 0x4bc   :  { %v430_v7 = vpop.f32.mrf.mxu0 }
 0x4be   :  { %v4943_v8 = vpop.f32.mrf.mxu0 }
 0x4c0   :  { %v503_v9 = vpop.f32.mrf.mxu1 }
 0x4c2   :  { %v4948_v10 = vpop.f32.mrf.mxu1 }
 0x4c4   :  { %v4959_v11 = vpop.f32.mrf.mxu0 }
 0x4c6   :  { %v579_v12 = vpop.f32.mrf.mxu0 }
 0x4c7   :  { %4961 = vmatpush3.xpose.msk.msra.mxu1 %vm186_vm2, %v579_v12  ;;  %4971 = vmatpush3.msra.mxu0 %v579_v12 }
 0x4c8   :  { %4965 = vmatprep.subr.mxu1 %v5405_v34  ;;  %4980 = vmatprep.subr.mxu0 %v4632_v47 }
 0x4ca   :  { %4963 = vmatmul.mubr.msk.f32.vlgmr.msra.gmra.mxu1 %vm186_vm2, %v579_v12 }
 0x4cb   :  { %4966 = vmatpush3.xpose.msk.msra.mxu1 %vm186_vm2, %v4959_v11  ;;  %4967 = vmatprep.mubr.msk.f32.mxu1 %vm5406_vm1, %v5405_v34 }
 0x4cc   :  { %4975 = vmatprep.subr.mxu1 %v5405_v34 }
 0x4ce   :  { %4968 = vmatmul.mubr.msk.f32.vlgmr.msra.gmra.mxu1 %vm186_vm2, %v4959_v11 }
 0x4cf   :  { %4976 = vmatpush3.msra.mxu1 %v4959_v11  ;;  %4977 = vmatprep.mubr.msk.f32.mxu1 %vm5406_vm1, %v5405_v34 }
 0x4d0   :  { %4985 = vmatprep.subr.mxu1 %v507_v40 }
 0x58a   :  { %v657_v13 = vpop.f32.mrf.mxu1 }
 0x58b   :  { %v734_v14 = vsel %vm333_vm4, -1e+30, %v657_v13 }
 0x58c   :  { %v736_v15 = vmul.f32 0.35355338, %v734_v14  ;;  %v4964_v16 = vpop.f32.mrf.mxu1 }
 0x58e   :  { %v730_v17 = vpop.f32.mrf.mxu1  ;;  %v738_v18 = vsel %vm186_vm2, %v736_v15, -inf }
 0x58f   :  { %v735_v19 = vsel %vm334_vm3, -1e+30, %v730_v17  ;;  %739 = vmax.xlane.f32.xlu0 %v738_v18 }
 0x590   :  { %v737_v20 = vmul.f32 0.35355338, %v735_v19  ;;  %v4969_v21 = vpop.f32.mrf.mxu1 }
 0x592   :  { %v741_v22 = vsel %vm186_vm2, %v737_v20, -inf }
 0x593   :  { %742 = vmax.xlane.f32.xlu1 %v741_v22 }
 0x618   :  { %v740_v23 = vpop.xlane.xlu0 %739 }
 0x619   :  { %v744_v24 = vsub.f32 %v736_v15, %v740_v23 }
 0x61b   :  { %v746_v26 = vmul.f32 1.442695, %v744_v24 }
 0x61c   :  { %v743_v28 = vpop.xlane.xlu1 %742 }
 0x61d   :  { %5313 = vpow2.f32 %v746_v26  ;;  %v745_v29 = vsub.f32 %v737_v20, %v743_v28  ;;  %v4649_v28 = vld [vmem:[%s6129_s6 + $0x10] sm:$0xff] }
 0x61f   :  { %v748_v31 = vmul.f32 1.442695, %v745_v29  ;;  %v4655_v29 = vld [vmem:[%s6128_s5 + $0x78] sm:$0xff] }
 0x621   :  { %5315 = vpow2.f32 %v748_v31 }
 0x62a   :  { %v5314_v32 = vpop.eup %5313 }
 0x62b   :  { %v750_v35 = vsel %vm186_vm2, %v5314_v32, 0.0 }
 0x62c   :  { %751 = vadd.xlane.f32.xlu0 %v750_v35 }
 0x62e   :  { %v5316_v36 = vpop.eup %5315 }
 0x62f   :  { %v753_v39 = vsel %vm186_vm2, %v5316_v36, 0.0 }
 0x630   :  { %754 = vadd.xlane.f32.xlu1 %v753_v39 }
 0x6b5   :  { %v752_v41 = vpop.xlane.xlu0 %751 }
 0x6b6   :  { %5317 = vrcp.f32 %v752_v41  ;;  %v4652_v41 = vld [vmem:[%s6128_s5 + $0x60] sm:$0xff] }
 0x6b9   :  { %v755_v42 = vpop.xlane.xlu1 %754 }
 0x6ba   :  { %5319 = vrcp.f32 %v755_v42 }
 0x6c3   :  { %v5318_v43 = vpop.eup %5317 }
 0x6c4   :  { %v758_v44 = vmul.f32 %v5318_v43, %v5314_v32 }
 0x6c6   :  { %4973 = vmatmul.mubr.msk.f32.vlgmr.msra.gmra.mxu0 %vm186_vm2, %v758_v44 }
 0x6c7   :  { %v5320_v45 = vpop.eup %5319  ;;  %4981 = vmatpush3.msra.mxu0 %v4632_v47 }
 0x6c8   :  { %v759_v46 = vmul.f32 %v5320_v45, %v5316_v36  ;;  %4990 = vmatprep.subr.mxu0 %v4640_v48  ;;  %v4654_v36 = vld [vmem:[%s6128_s5 + $0x70] sm:$0xff] }
 0x6ca   :  { %4978 = vmatmul.mubr.msk.f32.vlgmr.msra.gmra.mxu1 %vm186_vm2, %v759_v46 }
 0x6cb   :  { %4987 = vmatprep.mubr.msk.f32.mxu1 %vm186_vm2, %v430_v7  ;;  %4986 = vmatpush3.msra.mxu1 %v507_v40  ;;  %v4653_v40 = vld [vmem:[%s6128_s5 + $0x68] sm:$0xff] }
 0x6cc   :  { %5001 = vmatprep.subr.mxu1 %v5405_v34 }
 0x6ce   :  { %4988 = vmatmul.mubr.msk.f32.vlgmr.msra.gmra.mxu1 %vm186_vm2, %v503_v9 }
 0x6cf   :  { %5003 = vmatprep.mubr.msk.f32.mxu1 %vm5406_vm1, %v5405_v34 }
 0x786   :  { %v829_v49 = vpop.f32.mrf.mxu0 }
 0x787   :  { %4982 = vmatprep.mubr.msk.f32.mxu0 %vm186_vm2, %v829_v49 }
 0x788   :  { %v4974_v50 = vpop.f32.mrf.mxu0 }
 0x78a   :  { %v902_v51 = vpop.f32.mrf.mxu1 }
 0x78b   :  { %4983 = vmatmul.mubr.msk.f32.vlgmr.msra.gmra.mxu0 %vm186_vm2, %v902_v51 }
 0x78c   :  { %4991 = vmatpush3.msra.mxu0 %v4640_v48  ;;  %v4979_v53 = vpop.f32.mrf.mxu1  ;;  %4998 = vmatprep.mubr.msk.f32.mxu0 %vm55_vm0, %v5532_v30 }
 0x78d   :  { %4992 = vmatprep.subr.mxu0 %v4639_v52 }
 0x78e   :  { %4993 = vmatpush3.msra.mxu0 %v4639_v52  ;;  %v5669_v60 = vpop.f32.mrf.mxu1 }
 0x78f   :  { %4994 = vmatprep.subr.mxu0 %v4638_v54 }
 0x790   :  { %4995 = vmatpush3.msra.mxu0 %v4638_v54  ;;  %v5671_v61 = vpop.f32.mrf.mxu1 }
 0x791   :  { %4996 = vmatprep.subr.mxu0 %v4637_v55 }
 0x792   :  { %4997 = vmatpush3.msra.mxu0 %v4637_v55 }
 0x793   :  { %4999 = vmatmul.mubr.msk.f32.vlgmr.msra.gmra.mxu0 %vm55_vm0, %v5538_v33  ;;  %5011 = vmatprep.subr.mxu0 %v5405_v34 }
 0x794   :  { %5013 = vmatprep.mubr.msk.f32.mxu0 %vm5406_vm1, %v5405_v34 }
 0x84b   :  { %v5654_v56 = vpop.f32.mrf.mxu0 }
 0x84d   :  { %v5656_v57 = vpop.f32.mrf.mxu0 }
 0x84e   :  { %v1062_v43 = vadd.f32 %v5671_v61, %v5656_v57 }
 0x853   :  { %v5000_v58 = vpop.f32.mrf.mxu0 }
 0x855   :  { %v1141_v59 = vpop.f32.mrf.mxu0 }
 0x856   :  { %5002 = vmatpush3.xpose.msk.msra.mxu1 %vm186_vm2, %v1141_v59  ;;  %5012 = vmatpush3.msra.mxu0 %v1141_v59 }
 0x857   :  { %5006 = vmatprep.subr.mxu1 %v5405_v34  ;;  %5021 = vmatprep.subr.mxu0 %v4649_v28 }
 0x859   :  { %5004 = vmatmul.mubr.msk.f32.vlgmr.msra.gmra.mxu1 %vm186_vm2, %v1141_v59 }
 0x85a   :  { %5007 = vmatpush3.xpose.msk.msra.mxu1 %vm186_vm2, %v5000_v58  ;;  %5008 = vmatprep.mubr.msk.f32.mxu1 %vm5406_vm1, %v5405_v34 }
 0x85b   :  { %5016 = vmatprep.subr.mxu1 %v5405_v34 }
 0x85d   :  { %5009 = vmatmul.mubr.msk.f32.vlgmr.msra.gmra.mxu1 %vm186_vm2, %v5000_v58 }
 0x85e   :  { %5017 = vmatpush3.msra.mxu1 %v5000_v58  ;;  %5018 = vmatprep.mubr.msk.f32.mxu1 %vm5406_vm1, %v5405_v34 }
 0x85f   :  { %5047 = vmatprep.subr.mxu1 %v5405_v34 }
 0x919   :  { %v1219_v62 = vpop.f32.mrf.mxu1 }
 0x91a   :  { %v1296_v63 = vsel %vm333_vm4, -1e+30, %v1219_v62 }
 0x91b   :  { %v1298_v2 = vmul.f32 0.35355338, %v1296_v63  ;;  %v5005_v3 = vpop.f32.mrf.mxu1 }
 0x91d   :  { %v1292_v4 = vpop.f32.mrf.mxu1  ;;  %v1300_v5 = vsel %vm186_vm2, %v1298_v2, -inf }
 0x91e   :  { %v1297_v6 = vsel %vm334_vm3, -1e+30, %v1292_v4  ;;  %1301 = vmax.xlane.f32.xlu0 %v1300_v5 }
 0x91f   :  { %v1299_v7 = vmul.f32 0.35355338, %v1297_v6  ;;  %v5010_v8 = vpop.f32.mrf.mxu1 }
 0x921   :  { %v1303_v9 = vsel %vm186_vm2, %v1299_v7, -inf }
 0x922   :  { %1304 = vmax.xlane.f32.xlu1 %v1303_v9 }
 0x9a7   :  { %v1302_v10 = vpop.xlane.xlu0 %1301 }
 0x9a8   :  { %v1306_v11 = vsub.f32 %v1298_v2, %v1302_v10  ;;  %v4664_v10 = vld [vmem:[%s6129_s6 + $0x18] sm:$0xff] }
 0x9aa   :  { %v1308_v12 = vmul.f32 1.442695, %v1306_v11  ;;  %v2069_v11 = vld [vmem:[%s6125_s2 + $0x8] sm:$0xff] }
 0x9ab   :  { %v1305_v13 = vpop.xlane.xlu1 %1304 }
 0x9ac   :  { %5321 = vpow2.f32 %v1308_v12  ;;  %v1307_v14 = vsub.f32 %v1299_v7, %v1305_v13  ;;  %v2068_v12 = vld [vmem:[%s6125_s2] sm:$0xff]  ;;  %v2073_v13 = vsel %vm55_vm0, %v2069_v11, 0.0 }
 0x9ae   :  { %v1310_v15 = vmul.f32 1.442695, %v1307_v14  ;;  %v2070_v14 = vsel %vm55_vm0, %v2068_v12, 0.0 }
 0x9b0   :  { %5323 = vpow2.f32 %v1310_v15 }
 0x9b9   :  { %v5322_v16 = vpop.eup %5321 }
 0x9ba   :  { %v1312_v17 = vsel %vm186_vm2, %v5322_v16, 0.0 }
 0x9bb   :  { %1313 = vadd.xlane.f32.xlu0 %v1312_v17 }
 0x9bd   :  { %v5324_v18 = vpop.eup %5323 }
 0x9be   :  { %v1315_v19 = vsel %vm186_vm2, %v5324_v18, 0.0 }
 0x9bf   :  { %1316 = vadd.xlane.f32.xlu1 %v1315_v19 }
 0xa44   :  { %v1314_v20 = vpop.xlane.xlu0 %1313 }
 0xa45   :  { %5325 = vrcp.f32 %v1314_v20 }
 0xa48   :  { %v1317_v21 = vpop.xlane.xlu1 %1316 }
 0xa49   :  { %5327 = vrcp.f32 %v1317_v21 }
 0xa52   :  { %v5326_v22 = vpop.eup %5325 }
 0xa53   :  { %v1320_v23 = vmul.f32 %v5326_v22, %v5322_v16 }
 0xa55   :  { %5014 = vmatmul.mubr.msk.f32.vlgmr.msra.gmra.mxu0 %vm186_vm2, %v1320_v23 }
 0xa56   :  { %v5328_v24 = vpop.eup %5327  ;;  %5022 = vmatpush3.msra.mxu0 %v4649_v28 }
 0xa57   :  { %v1321_v26 = vmul.f32 %v5328_v24, %v5324_v18  ;;  %5026 = vmatprep.subr.mxu0 %v4655_v29 }
 0xa59   :  { %5019 = vmatmul.mubr.msk.f32.vlgmr.msra.gmra.mxu1 %vm186_vm2, %v1321_v26 }
 0xa5a   :  { %5049 = vmatprep.mubr.msk.f32.mxu1 %vm5406_vm1, %v5405_v34 }
 0xb15   :  { %v1391_v31 = vpop.f32.mrf.mxu0 }
 0xb16   :  { %5023 = vmatprep.mubr.msk.f32.mxu0 %vm186_vm2, %v1391_v31 }
 0xb17   :  { %v5015_v32 = vpop.f32.mrf.mxu0 }
 0xb19   :  { %v1464_v35 = vpop.f32.mrf.mxu1 }
 0xb1a   :  { %5024 = vmatmul.mubr.msk.f32.vlgmr.msra.gmra.mxu0 %vm186_vm2, %v1464_v35 }
 0xb1b   :  { %5027 = vmatpush3.msra.mxu0 %v4655_v29  ;;  %v5020_v39 = vpop.f32.mrf.mxu1  ;;  %5034 = vmatprep.mubr.msk.f32.mxu0 %vm55_vm0, %v5532_v30  ;;  %v1067_v30 = vadd.f32 %v5669_v60, %v5654_v56 }
 0xb1c   :  { %5028 = vmatprep.subr.mxu0 %v4654_v36 }
 0xb1d   :  { %5029 = vmatpush3.msra.mxu0 %v4654_v36 }
 0xb1e   :  { %5030 = vmatprep.subr.mxu0 %v4653_v40 }
 0xb1f   :  { %5031 = vmatpush3.msra.mxu0 %v4653_v40 }
 0xb20   :  { %5032 = vmatprep.subr.mxu0 %v4652_v41 }
 0xb21   :  { %5033 = vmatpush3.msra.mxu0 %v4652_v41 }
 0xb22   :  { %5035 = vmatmul.mubr.msk.f32.vlgmr.msra.gmra.mxu0 %vm55_vm0, %v5538_v33  ;;  %5037 = vmatprep.subr.mxu0 %v5405_v34 }
 0xb23   :  { %5039 = vmatprep.mubr.msk.f32.mxu0 %vm5406_vm1, %v5405_v34 }
 0xbda   :  { %v5025_v42 = vpop.f32.mrf.mxu0 }
 0xbdb   :  { %v5713_v44 = vadd.f32 %v5025_v42, %v1067_v30  ;;  %v2104_v42 = vld [vmem:[%s6130_s7 + $0x10] sm:$0xff] }
 0xbdc   :  { %v1542_v45 = vpop.f32.mrf.mxu0 }
 0xbdd   :  { %v5715_v46 = vadd.f32 %v1542_v45, %v1062_v43  ;;  %v2103_v43 = vld [vmem:[%s6130_s7 + $0x8] sm:$0xff] }
 0xbe2   :  { %v5036_v47 = vpop.f32.mrf.mxu0 }
 0xbe4   :  { %v1624_v48 = vpop.f32.mrf.mxu0 }
 0xbe5   :  { %5038 = vmatpush3.xpose.msk.msra.mxu0 %vm186_vm2, %v1624_v48  ;;  %5048 = vmatpush3.msra.mxu1 %v1624_v48 }
 0xbe6   :  { %5042 = vmatprep.subr.mxu0 %v5405_v34  ;;  %5057 = vmatprep.subr.mxu1 %v4664_v10 }
 0xbe8   :  { %5040 = vmatmul.mubr.msk.f32.vlgmr.msra.gmra.mxu0 %vm186_vm2, %v1624_v48 }
 0xbe9   :  { %5043 = vmatpush3.xpose.msk.msra.mxu0 %vm186_vm2, %v5036_v47  ;;  %5044 = vmatprep.mubr.msk.f32.mxu0 %vm5406_vm1, %v5405_v34 }
 0xbea   :  { %5052 = vmatprep.subr.mxu0 %v5405_v34 }
 0xbec   :  { %5045 = vmatmul.mubr.msk.f32.vlgmr.msra.gmra.mxu0 %vm186_vm2, %v5036_v47 }
 0xbed   :  { %5053 = vmatpush3.msra.mxu0 %v5036_v47  ;;  %5054 = vmatprep.mubr.msk.f32.mxu0 %vm5406_vm1, %v5405_v34 }
 0xca8   :  { %v1702_v33 = vpop.f32.mrf.mxu0 }
 0xca9   :  { %v1779_v49 = vsel %vm333_vm4, -1e+30, %v1702_v33 }
 0xcaa   :  { %v1781_v50 = vmul.f32 0.35355338, %v1779_v49  ;;  %v5041_v51 = vpop.f32.mrf.mxu0 }
 0xcac   :  { %v1775_v52 = vpop.f32.mrf.mxu0  ;;  %v1783_v53 = vsel %vm186_vm2, %v1781_v50, -inf }
 0xcad   :  { %v1780_v54 = vsel %vm334_vm3, -1e+30, %v1775_v52  ;;  %1784 = vmax.xlane.f32.xlu0 %v1783_v53 }
 0xcae   :  { %v1782_v55 = vmul.f32 0.35355338, %v1780_v54  ;;  %v5046_v56 = vpop.f32.mrf.mxu0 }
 0xcb0   :  { %v1786_v57 = vsel %vm186_vm2, %v1782_v55, -inf }
 0xcb1   :  { %1787 = vmax.xlane.f32.xlu1 %v1786_v57 }
 0xd36   :  { %v1785_v58 = vpop.xlane.xlu0 %1784 }
 0xd37   :  { %v1789_v59 = vsub.f32 %v1781_v50, %v1785_v58 }
 0xd39   :  { %v1791_v60 = vmul.f32 1.442695, %v1789_v59 }
 0xd3a   :  { %v1788_v61 = vpop.xlane.xlu1 %1787 }
 0xd3b   :  { %5329 = vpow2.f32 %v1791_v60  ;;  %v1790_v38 = vsub.f32 %v1782_v55, %v1788_v61 }
 0xd3d   :  { %v1793_v62 = vmul.f32 1.442695, %v1790_v38 }
 0xd3f   :  { %5331 = vpow2.f32 %v1793_v62 }
 0xd48   :  { %v5330_v63 = vpop.eup %5329 }
 0xd49   :  { %v1795_v2 = vsel %vm186_vm2, %v5330_v63, 0.0 }
 0xd4a   :  { %1796 = vadd.xlane.f32.xlu0 %v1795_v2 }
 0xd4c   :  { %v5332_v37 = vpop.eup %5331 }
 0xd4d   :  { %v1798_v3 = vsel %vm186_vm2, %v5332_v37, 0.0 }
 0xd4e   :  { %1799 = vadd.xlane.f32.xlu1 %v1798_v3  ;;  %2071 = vadd.xlane.f32.xlu0 %v2070_v14 }
 0xd52   :  { %2074 = vadd.xlane.f32.xlu1 %v2073_v13 }
 0xdd3   :  { %v1797_v4 = vpop.xlane.xlu0 %1796 }
 0xdd4   :  { %5333 = vrcp.f32 %v1797_v4 }
 0xdd7   :  { %v1800_v5 = vpop.xlane.xlu1 %1799  ;;  %v2072_v20 = vpop.xlane.xlu0 %2071 }
 0xdd8   :  { %5335 = vrcp.f32 %v1800_v5  ;;  %v2076_v22 = vmul.f32 0.03125, %v2072_v20  ;;  %v5823_v20 = vld [vmem:[%s6127_s4 + $0x8] sm:$0xff] }
 0xdd9   :  { %vm2421_vm5 = vcmp.gt.f32.partialorder %v5823_v20, 0.5 }
 0xdda   :  { %v2078_v28 = vsub.f32 %v2068_v12, %v2076_v22 }
 0xddb   :  { %v2075_v19 = vpop.xlane.xlu1 %2074 }
 0xddc   :  { %v2077_v21 = vmul.f32 0.03125, %v2075_v19  ;;  %v2080_v40 = vmul.f32 %v2078_v28, %v2078_v28 }
 0xdde   :  { %v2079_v23 = vsub.f32 %v2069_v11, %v2077_v21  ;;  %v5828_v21 = vld [vmem:[%s6127_s4] sm:$0xff] }
 0xddf   :  { %vm2420_vm6 = vcmp.gt.f32.partialorder %v5828_v21, 0.5 }
 0xde0   :  { %v2081_v35 = vmul.f32 %v2079_v23, %v2079_v23 }
 0xde1   :  { %v5334_v6 = vpop.eup %5333 }
 0xde2   :  { %v1803_v7 = vmul.f32 %v5334_v6, %v5330_v63  ;;  %v2085_v30 = vsel %vm55_vm0, %v2081_v35, 0.0 }
 0xde4   :  { %5050 = vmatmul.mubr.msk.f32.vlgmr.msra.gmra.mxu1 %vm186_vm2, %v1803_v7 }
 0xde5   :  { %v5336_v8 = vpop.eup %5335  ;;  %5058 = vmatpush3.msra.mxu1 %v4664_v10 }
 0xde6   :  { %v1804_v9 = vmul.f32 %v5336_v8, %v5332_v37 }
 0xde8   :  { %5055 = vmatmul.mubr.msk.f32.vlgmr.msra.gmra.mxu0 %vm186_vm2, %v1804_v9 }
 0xea4   :  { %v1874_v15 = vpop.f32.mrf.mxu1 }
 0xea5   :  { %5059 = vmatprep.mubr.msk.f32.mxu1 %vm186_vm2, %v1874_v15 }
 0xea6   :  { %v5051_v16 = vpop.f32.mrf.mxu1 }
 0xea8   :  { %v1947_v17 = vpop.f32.mrf.mxu0 }
 0xea9   :  { %5060 = vmatmul.mubr.msk.f32.vlgmr.msra.gmra.mxu1 %vm186_vm2, %v1947_v17 }
 0xeaa   :  { %v5056_v18 = vpop.f32.mrf.mxu0 }
 0xf69   :  { %v5061_v24 = vpop.f32.mrf.mxu1 }
 0xf6a   :  { %v2035_v26 = vadd.f32 %v5061_v24, %v5713_v44  ;;  %v2102_v44 = vld [vmem:[%s6130_s7] sm:$0xff] }
 0xf6b   :  { %v2025_v29 = vpop.f32.mrf.mxu1 }
 0xf6c   :  { %v5752_v31 = vadd.f32 %v2035_v26, %v5498_v1  ;;  %v2034_v32 = vadd.f32 %v2025_v29, %v5715_v46  ;;  %v2082_v1 = vsel %vm55_vm0, %v2080_v40, 0.0 }
 0xf6e   :  { %v5756_v36 = vadd.f32 %v2034_v32, %v5493_v0  ;;  %v2041_v39 = vsel %vm55_vm0, %v5752_v31, 0.0  ;;  %v2105_v0 = vld [vmem:[%s6130_s7 + $0x18] sm:$0xff] }
 0xf6f   :  { %2042 = vadd.xlane.f32.xlu1 %v2041_v39  ;;  %5073 = vmatprep.subr.mxu1 %v2105_v0 }
 0xf70   :  { %v2038_v41 = vsel %vm55_vm0, %v5756_v36, 0.0  ;;  %5062 = vmatprep.subr.mxu0 %v2105_v0  ;;  %5074 = vmatpush3.msra.mxu1 %v2105_v0 }
 0xf71   :  { %2039 = vadd.xlane.f32.xlu0 %v2038_v41  ;;  %5063 = vmatpush3.msra.mxu0 %v2105_v0 }
 0xf72   :  { %5075 = vmatprep.subr.mxu1 %v2104_v42  ;;  %5064 = vmatprep.subr.mxu0 %v2104_v42 }
 0xf73   :  { %2086 = vadd.xlane.f32.xlu1 %v2085_v30  ;;  %5076 = vmatpush3.msra.mxu1 %v2104_v42 }
 0xf74   :  { %5065 = vmatpush3.msra.mxu0 %v2104_v42  ;;  %5077 = vmatprep.subr.mxu1 %v2103_v43 }
 0xf75   :  { %2083 = vadd.xlane.f32.xlu0 %v2082_v1  ;;  %5066 = vmatprep.subr.mxu0 %v2103_v43 }
 0xf76   :  { %5078 = vmatpush3.msra.mxu1 %v2103_v43  ;;  %5067 = vmatpush3.msra.mxu0 %v2103_v43 }
 0xf77   :  { %5079 = vmatprep.subr.mxu1 %v2102_v44  ;;  %5068 = vmatprep.subr.mxu0 %v2102_v44 }
 0xf78   :  { %5080 = vmatpush3.msra.mxu1 %v2102_v44  ;;  %5069 = vmatpush3.msra.mxu0 %v2102_v44 }
 0xf79   :  { %5089 = vmatprep.subr.mxu1 %v5405_v34  ;;  %5084 = vmatprep.subr.mxu0 %v5405_v34 }
 0xff8   :  { %v2043_v45 = vpop.xlane.xlu1 %2042 }
 0xff9   :  { %v2045_v46 = vmul.f32 0.03125, %v2043_v45 }
 0xffa   :  { %v2040_v47 = vpop.xlane.xlu0 %2039 }
 0xffb   :  { %v2047_v48 = vsub.f32 %v5752_v31, %v2045_v46  ;;  %v2044_v33 = vmul.f32 0.03125, %v2040_v47 }
 0xffc   :  { %v2087_v49 = vpop.xlane.xlu1 %2086 }
 0xffd   :  { %v2046_v50 = vsub.f32 %v5756_v36, %v2044_v33  ;;  %v2089_v51 = vmul.f32 0.03125, %v2087_v49  ;;  %v2049_v52 = vmul.f32 %v2047_v48, %v2047_v48 }
 0xffe   :  { %v2084_v53 = vpop.xlane.xlu0 %2083 }
 0xfff   :  { %v2091_v54 = vadd.f32 1e-05, %v2089_v51  ;;  %v2088_v55 = vmul.f32 0.03125, %v2084_v53  ;;  %v2053_v56 = vsel %vm55_vm0, %v2049_v52, 0.0  ;;  %v2048_v57 = vmul.f32 %v2046_v50, %v2046_v50  ;;  %v4679_v53 = vld [vmem:[%s6130_s7 + $0x30] sm:$0xff] }
0x1000   :  { %2054 = vadd.xlane.f32.xlu1 %v2053_v56  ;;  %v4677_v56 = vld [vmem:[%s6130_s7 + $0x20] sm:$0xff] }
0x1001   :  { %5337 = vrsqrt.f32 %v2091_v54  ;;  %v2090_v58 = vadd.f32 1e-05, %v2088_v55  ;;  %v2050_v59 = vsel %vm55_vm0, %v2048_v57, 0.0  ;;  %v4678_v55 = vld [vmem:[%s6130_s7 + $0x28] sm:$0xff] }
0x1002   :  { %2051 = vadd.xlane.f32.xlu0 %v2050_v59 }
0x1003   :  { %5339 = vrsqrt.f32 %v2090_v58 }
0x100e   :  { %v5338_v60 = vpop.eup %5337 }
0x100f   :  { %v2095_v61 = vmul.f32 %v5338_v60, %v2079_v23 }
0x1010   :  { %v5340_v38 = vpop.eup %5339 }
0x1011   :  { %v2094_v62 = vmul.f32 %v5340_v38, %v2078_v28  ;;  %v2097_v63 = vmul.f32 %v5523_v25, %v2095_v61 }
0x1013   :  { %v2096_v2 = vmul.f32 %v5523_v25, %v2094_v62  ;;  %v5788_v3 = vadd.f32 %v5528_v27, %v2097_v63 }
0x1015   :  { %v5785_v37 = vadd.f32 %v5528_v27, %v2096_v2 }
0x1017   :  { %5081 = vmatprep.mubr.msk.f32.mxu1 %vm55_vm0, %v5785_v37 }
0x1018   :  { %5082 = vmatmul.mubr.msk.f32.vlgmr.msra.gmra.mxu1 %vm55_vm0, %v5788_v3 }
0x1019   :  { %5091 = vmatprep.mubr.msk.f32.mxu1 %vm5406_vm1, %v5405_v34 }
0x1089   :  { %v2055_v4 = vpop.xlane.xlu1 %2054 }
0x108a   :  { %v2057_v5 = vmul.f32 0.03125, %v2055_v4 }
0x108b   :  { %v2052_v6 = vpop.xlane.xlu0 %2051 }
0x108c   :  { %v2059_v7 = vadd.f32 1e-05, %v2057_v5  ;;  %v2056_v8 = vmul.f32 0.03125, %v2052_v6 }
0x108e   :  { %5341 = vrsqrt.f32 %v2059_v7  ;;  %v2058_v9 = vadd.f32 1e-05, %v2056_v8 }
0x1090   :  { %5343 = vrsqrt.f32 %v2058_v9 }
0x109b   :  { %v5342_v10 = vpop.eup %5341 }
0x109c   :  { %v2063_v11 = vmul.f32 %v5342_v10, %v2047_v48  ;;  %v4680_v48 = vld [vmem:[%s6130_s7 + $0x38] sm:$0xff] }
0x109d   :  { %v5344_v12 = vpop.eup %5343 }
0x109e   :  { %v2062_v13 = vmul.f32 %v5344_v12, %v2046_v50  ;;  %v2065_v14 = vmul.f32 %v5523_v25, %v2063_v11 }
0x10a0   :  { %v2064_v15 = vmul.f32 %v5523_v25, %v2062_v13  ;;  %v5802_v17 = vadd.f32 %v5528_v27, %v2065_v14 }
0x10a2   :  { %v5799_v16 = vadd.f32 %v5528_v27, %v2064_v15 }
0x10a4   :  { %5070 = vmatprep.mubr.msk.f32.mxu0 %vm55_vm0, %v5799_v16 }
0x10a5   :  { %5071 = vmatmul.mubr.msk.f32.vlgmr.msra.gmra.mxu0 %vm55_vm0, %v5802_v17 }
0x10a6   :  { %5086 = vmatprep.mubr.msk.f32.mxu0 %vm5406_vm1, %v5405_v34 }
0x10d8   :  { %v5083_v18 = vpop.f32.mrf.mxu1 }
0x10d9   :  { %5090 = vmatpush3.xpose.msk.msra.mxu1 %vm186_vm2, %v5083_v18 }
0x10da   :  { %v2259_v19 = vpop.f32.mrf.mxu1  ;;  %5099 = vmatprep.subr.mxu1 %v5405_v34 }
0x10db   :  { %5085 = vmatpush3.xpose.msk.msra.mxu0 %vm186_vm2, %v2259_v19 }
0x10dc   :  { %5094 = vmatprep.subr.mxu0 %v5405_v34 }
0x1165   :  { %v5072_v25 = vpop.f32.mrf.mxu0 }
0x1166   :  { %5092 = vmatmul.mubr.msk.f32.vlgmr.msra.gmra.mxu1 %vm186_vm2, %v5072_v25 }
0x1167   :  { %5100 = vmatpush3.msra.mxu1 %v5083_v18  ;;  %v2178_v27 = vpop.f32.mrf.mxu0  ;;  %5101 = vmatprep.mubr.msk.f32.mxu1 %vm5406_vm1, %v5405_v34 }
0x1168   :  { %5087 = vmatmul.mubr.msk.f32.vlgmr.msra.gmra.mxu0 %vm186_vm2, %v2178_v27  ;;  %5115 = vmatprep.subr.mxu1 %v4680_v48 }
0x1169   :  { %5095 = vmatpush3.msra.mxu0 %v2259_v19  ;;  %5096 = vmatprep.mubr.msk.f32.mxu0 %vm5406_vm1, %v5405_v34 }
0x116a   :  { %5104 = vmatprep.subr.mxu0 %v4680_v48 }
0x1226   :  { %v2416_v22 = vpop.f32.mrf.mxu1 }
0x1227   :  { %v2423_v23 = vsel %vm2421_vm5, -1e+30, %v2416_v22 }
0x1228   :  { %v2425_v24 = vmul.f32 0.35355338, %v2423_v23  ;;  %v2340_v26 = vpop.f32.mrf.mxu0  ;;  %v5093_v28 = vpop.f32.mrf.mxu1 }
0x1229   :  { %v2422_v29 = vsel %vm2420_vm6, -1e+30, %v2340_v26  ;;  %v2594_v26 = vld [vmem:[%s6131_s8] sm:$0xff] }
0x122a   :  { %v2424_v32 = vmul.f32 0.35355338, %v2422_v29  ;;  %v5088_v35 = vpop.f32.mrf.mxu0  ;;  %v2429_v39 = vsel %vm186_vm2, %v2425_v24, -inf }
0x122b   :  { %2430 = vmax.xlane.f32.xlu0 %v2429_v39 }
0x122c   :  { %v2426_v40 = vsel %vm186_vm2, %v2424_v32, -inf }
0x122d   :  { %2427 = vmax.xlane.f32.xlu1 %v2426_v40  ;;  %v4699_v40 = vld [vmem:[%s6130_s7 + $0x58] sm:$0xff] }
0x12b4   :  { %v2431_v41 = vpop.xlane.xlu0 %2430 }
0x12b5   :  { %v2433_v30 = vsub.f32 %v2425_v24, %v2431_v41 }
0x12b6   :  { %v2428_v1 = vpop.xlane.xlu1 %2427 }
0x12b7   :  { %v2436_v0 = vmul.f32 1.442695, %v2433_v30  ;;  %v2432_v42 = vsub.f32 %v2424_v32, %v2428_v1  ;;  %v4698_v30 = vld [vmem:[%s6130_s7 + $0x50] sm:$0xff]  ;;  %v4697_v1 = vld [vmem:[%s6130_s7 + $0x48] sm:$0xff] }
0x12b9   :  { %5345 = vpow2.f32 %v2436_v0  ;;  %v2434_v43 = vmul.f32 1.442695, %v2432_v42  ;;  %v4696_v0 = vld [vmem:[%s6130_s7 + $0x40] sm:$0xff]  ;;  %v4691_v42 = vld [vmem:[%s6131_s8 + $0x8] sm:$0xff] }
0x12bb   :  { %5347 = vpow2.f32 %v2434_v43 }
0x12c6   :  { %v5346_v44 = vpop.eup %5345 }
0x12c7   :  { %v2441_v45 = vsel %vm186_vm2, %v5346_v44, 0.0 }
0x12c8   :  { %v5348_v46 = vpop.eup %5347  ;;  %2442 = vadd.xlane.f32.xlu0 %v2441_v45 }
0x12c9   :  { %v2438_v47 = vsel %vm186_vm2, %v5348_v46, 0.0 }
0x12ca   :  { %2439 = vadd.xlane.f32.xlu1 %v2438_v47 }
0x1351   :  { %v2443_v33 = vpop.xlane.xlu0 %2442 }
0x1352   :  { %5349 = vrcp.f32 %v2443_v33 }
0x1353   :  { %v2440_v49 = vpop.xlane.xlu1 %2439 }
0x1354   :  { %5351 = vrcp.f32 %v2440_v49 }
0x135f   :  { %v5350_v50 = vpop.eup %5349 }
0x1360   :  { %v2447_v51 = vmul.f32 %v5350_v50, %v5346_v44 }
0x1361   :  { %v5352_v52 = vpop.eup %5351 }
0x1362   :  { %5102 = vmatmul.mubr.msk.f32.vlgmr.msra.gmra.mxu1 %vm186_vm2, %v2447_v51  ;;  %v2446_v54 = vmul.f32 %v5352_v52, %v5348_v46 }
0x1363   :  { %5116 = vmatpush3.msra.mxu1 %v4680_v48  ;;  %5123 = vmatprep.mubr.msk.f32.mxu1 %vm55_vm0, %v5785_v37 }
0x1364   :  { %5117 = vmatprep.subr.mxu1 %v4679_v53  ;;  %5097 = vmatmul.mubr.msk.f32.vlgmr.msra.gmra.mxu0 %vm186_vm2, %v2446_v54 }
0x1365   :  { %5105 = vmatpush3.msra.mxu0 %v4680_v48  ;;  %5118 = vmatpush3.msra.mxu1 %v4679_v53 }
0x1366   :  { %5106 = vmatprep.subr.mxu0 %v4679_v53  ;;  %5112 = vmatprep.mubr.msk.f32.mxu0 %vm55_vm0, %v5799_v16 }
0x1367   :  { %5119 = vmatprep.subr.mxu1 %v4678_v55  ;;  %5107 = vmatpush3.msra.mxu0 %v4679_v53 }
0x1368   :  { %5120 = vmatpush3.msra.mxu1 %v4678_v55  ;;  %5108 = vmatprep.subr.mxu0 %v4678_v55 }
0x1369   :  { %5121 = vmatprep.subr.mxu1 %v4677_v56  ;;  %5109 = vmatpush3.msra.mxu0 %v4678_v55 }
0x136a   :  { %5122 = vmatpush3.msra.mxu1 %v4677_v56  ;;  %5110 = vmatprep.subr.mxu0 %v4677_v56 }
0x136b   :  { %5124 = vmatmul.mubr.msk.f32.vlgmr.msra.gmra.mxu1 %vm55_vm0, %v5788_v3  ;;  %5111 = vmatpush3.msra.mxu0 %v4677_v56 }
0x136c   :  { %5113 = vmatmul.mubr.msk.f32.vlgmr.msra.gmra.mxu0 %vm55_vm0, %v5802_v17  ;;  %5131 = vmatprep.subr.mxu1 %v5405_v34 }
0x136d   :  { %5126 = vmatprep.subr.mxu0 %v5405_v34  ;;  %5133 = vmatprep.mubr.msk.f32.mxu1 %vm5406_vm1, %v5405_v34 }
0x136e   :  { %5128 = vmatprep.mubr.msk.f32.mxu0 %vm5406_vm1, %v5405_v34 }
0x1422   :  { %v2590_v57 = vpop.f32.mrf.mxu1 }
0x1424   :  { %v2517_v58 = vpop.f32.mrf.mxu0  ;;  %v5103_v59 = vpop.f32.mrf.mxu1 }
0x1426   :  { %v5098_v60 = vpop.f32.mrf.mxu0 }
0x142b   :  { %v5125_v61 = vpop.f32.mrf.mxu1 }
0x142c   :  { %5132 = vmatpush3.xpose.msk.msra.mxu1 %vm186_vm2, %v5125_v61  ;;  %v5114_v38 = vpop.f32.mrf.mxu0 }
0x142d   :  { %v2741_v62 = vpop.f32.mrf.mxu1  ;;  %5141 = vmatprep.subr.mxu1 %v5405_v34 }
0x142e   :  { %5127 = vmatpush3.xpose.msk.msra.mxu0 %vm186_vm2, %v2741_v62  ;;  %v2666_v63 = vpop.f32.mrf.mxu0 }
0x142f   :  { %5134 = vmatmul.mubr.msk.f32.vlgmr.msra.gmra.mxu1 %vm186_vm2, %v5114_v38  ;;  %5136 = vmatprep.subr.mxu0 %v5405_v34 }
0x1430   :  { %5142 = vmatpush3.msra.mxu1 %v5125_v61  ;;  %5143 = vmatprep.mubr.msk.f32.mxu1 %vm5406_vm1, %v5405_v34 }
0x1431   :  { %5129 = vmatmul.mubr.msk.f32.vlgmr.msra.gmra.mxu0 %vm186_vm2, %v2666_v63  ;;  %5151 = vmatprep.subr.mxu1 %v2594_v26 }
0x1432   :  { %5137 = vmatpush3.msra.mxu0 %v2741_v62  ;;  %5138 = vmatprep.mubr.msk.f32.mxu0 %vm5406_vm1, %v5405_v34 }
0x1433   :  { %5146 = vmatprep.subr.mxu0 %v4691_v42 }
0x14ef   :  { %v2898_v2 = vpop.f32.mrf.mxu1 }
0x14f0   :  { %v2903_v4 = vsel %vm2421_vm5, -1e+30, %v2898_v2 }
0x14f1   :  { %v2905_v5 = vmul.f32 0.35355338, %v2903_v4  ;;  %v2822_v6 = vpop.f32.mrf.mxu0  ;;  %v5135_v7 = vpop.f32.mrf.mxu1 }
0x14f2   :  { %v2902_v8 = vsel %vm2420_vm6, -1e+30, %v2822_v6 }
0x14f3   :  { %v2904_v9 = vmul.f32 0.35355338, %v2902_v8  ;;  %v5130_v10 = vpop.f32.mrf.mxu0  ;;  %v2909_v11 = vsel %vm186_vm2, %v2905_v5, -inf }
0x14f4   :  { %2910 = vmax.xlane.f32.xlu1 %v2909_v11 }
0x14f5   :  { %v2906_v12 = vsel %vm186_vm2, %v2904_v9, -inf }
0x14f6   :  { %2907 = vmax.xlane.f32.xlu0 %v2906_v12  ;;  %v4716_v12 = vld [vmem:[%s6130_s7 + $0x78] sm:$0xff] }
0x157d   :  { %v2911_v13 = vpop.xlane.xlu1 %2910 }
0x157e   :  { %v2913_v14 = vsub.f32 %v2905_v5, %v2911_v13 }
0x157f   :  { %v2908_v15 = vpop.xlane.xlu0 %2907 }
0x1580   :  { %v2916_v18 = vmul.f32 1.442695, %v2913_v14  ;;  %v2912_v19 = vsub.f32 %v2904_v9, %v2908_v15 }
0x1582   :  { %5353 = vpow2.f32 %v2916_v18  ;;  %v2914_v25 = vmul.f32 1.442695, %v2912_v19 }
0x1584   :  { %5355 = vpow2.f32 %v2914_v25  ;;  %v4715_v25 = vld [vmem:[%s6130_s7 + $0x70] sm:$0xff] }
0x158f   :  { %v5354_v27 = vpop.eup %5353 }
0x1590   :  { %v2921_v22 = vsel %vm186_vm2, %v5354_v27, 0.0 }
0x1591   :  { %v5356_v23 = vpop.eup %5355  ;;  %2922 = vadd.xlane.f32.xlu1 %v2921_v22  ;;  %v4714_v22 = vld [vmem:[%s6130_s7 + $0x68] sm:$0xff] }
0x1592   :  { %v2918_v24 = vsel %vm186_vm2, %v5356_v23, 0.0 }
0x1593   :  { %2919 = vadd.xlane.f32.xlu0 %v2918_v24 }
0x161a   :  { %v2923_v28 = vpop.xlane.xlu1 %2922 }
0x161b   :  { %5357 = vrcp.f32 %v2923_v28 }
0x161c   :  { %v2920_v29 = vpop.xlane.xlu0 %2919 }
0x161d   :  { %5359 = vrcp.f32 %v2920_v29 }
0x1628   :  { %v5358_v32 = vpop.eup %5357 }
0x1629   :  { %v2927_v35 = vmul.f32 %v5358_v32, %v5354_v27 }
0x162a   :  { %v5360_v39 = vpop.eup %5359 }
0x162b   :  { %5144 = vmatmul.mubr.msk.f32.vlgmr.msra.gmra.mxu1 %vm186_vm2, %v2927_v35  ;;  %v2926_v41 = vmul.f32 %v5360_v39, %v5356_v23  ;;  %v4713_v23 = vld [vmem:[%s6130_s7 + $0x60] sm:$0xff] }
0x162c   :  { %5153 = vmatprep.mubr.msk.f32.mxu1 %vm186_vm2, %v2517_v58  ;;  %5152 = vmatpush3.msra.mxu1 %v2594_v26 }
0x162d   :  { %5139 = vmatmul.mubr.msk.f32.vlgmr.msra.gmra.mxu0 %vm186_vm2, %v2926_v41  ;;  %5167 = vmatprep.subr.mxu1 %v4699_v40 }
0x162e   :  { %5147 = vmatpush3.msra.mxu0 %v4691_v42 }
0x162f   :  { %5154 = vmatmul.mubr.msk.f32.vlgmr.msra.gmra.mxu1 %vm186_vm2, %v2590_v57  ;;  %5156 = vmatprep.subr.mxu0 %v4699_v40 }
0x1630   :  { %5168 = vmatpush3.msra.mxu1 %v4699_v40  ;;  %5175 = vmatprep.mubr.msk.f32.mxu1 %vm55_vm0, %v5785_v37 }
0x1631   :  { %5169 = vmatprep.subr.mxu1 %v4698_v30 }
0x1632   :  { %5170 = vmatpush3.msra.mxu1 %v4698_v30 }
0x1633   :  { %5171 = vmatprep.subr.mxu1 %v4697_v1 }
0x1634   :  { %5172 = vmatpush3.msra.mxu1 %v4697_v1 }
0x1635   :  { %5173 = vmatprep.subr.mxu1 %v4696_v0 }
0x1636   :  { %5174 = vmatpush3.msra.mxu1 %v4696_v0 }
0x1637   :  { %5176 = vmatmul.mubr.msk.f32.vlgmr.msra.gmra.mxu1 %vm55_vm0, %v5788_v3  ;;  %5183 = vmatprep.subr.mxu1 %v5405_v34 }
0x1638   :  { %5185 = vmatprep.mubr.msk.f32.mxu1 %vm5406_vm1, %v5405_v34 }
0x16eb   :  { %v3070_v43 = vpop.f32.mrf.mxu1 }
0x16ed   :  { %v2997_v44 = vpop.f32.mrf.mxu0  ;;  %v5145_v45 = vpop.f32.mrf.mxu1 }
0x16ee   :  { %5148 = vmatprep.mubr.msk.f32.mxu0 %vm186_vm2, %v2997_v44 }
0x16ef   :  { %v5140_v46 = vpop.f32.mrf.mxu0  ;;  %5149 = vmatmul.mubr.msk.f32.vlgmr.msra.gmra.mxu0 %vm186_vm2, %v3070_v43  ;;  %v5919_v47 = vpop.f32.mrf.mxu1 }
0x16f0   :  { %5157 = vmatpush3.msra.mxu0 %v4699_v40  ;;  %5164 = vmatprep.mubr.msk.f32.mxu0 %vm55_vm0, %v5799_v16 }
0x16f1   :  { %5158 = vmatprep.subr.mxu0 %v4698_v30  ;;  %v5921_v48 = vpop.f32.mrf.mxu1 }
0x16f2   :  { %5159 = vmatpush3.msra.mxu0 %v4698_v30 }
0x16f3   :  { %5160 = vmatprep.subr.mxu0 %v4697_v1 }
0x16f4   :  { %5161 = vmatpush3.msra.mxu0 %v4697_v1 }
0x16f5   :  { %5162 = vmatprep.subr.mxu0 %v4696_v0 }
0x16f6   :  { %5163 = vmatpush3.msra.mxu0 %v4696_v0 }
0x16f7   :  { %5165 = vmatmul.mubr.msk.f32.vlgmr.msra.gmra.mxu0 %vm55_vm0, %v5802_v17  ;;  %v5177_v33 = vpop.f32.mrf.mxu1  ;;  %5178 = vmatprep.subr.mxu0 %v5405_v34 }
0x16f8   :  { %5184 = vmatpush3.xpose.msk.msra.mxu1 %vm186_vm2, %v5177_v33  ;;  %5180 = vmatprep.mubr.msk.f32.mxu0 %vm5406_vm1, %v5405_v34 }
0x16f9   :  { %v3384_v49 = vpop.f32.mrf.mxu1  ;;  %5193 = vmatprep.subr.mxu1 %v5405_v34 }
0x16fa   :  { %5179 = vmatpush3.xpose.msk.msra.mxu0 %vm186_vm2, %v3384_v49 }
0x16fb   :  { %5188 = vmatprep.subr.mxu0 %v5405_v34 }
0x17af   :  { %v5932_v50 = vpop.f32.mrf.mxu0 }
0x17b1   :  { %v5934_v51 = vpop.f32.mrf.mxu0 }
0x17b7   :  { %v5166_v52 = vpop.f32.mrf.mxu0 }
0x17b8   :  { %5186 = vmatmul.mubr.msk.f32.vlgmr.msra.gmra.mxu1 %vm186_vm2, %v5166_v52 }
0x17b9   :  { %5194 = vmatpush3.msra.mxu1 %v5177_v33  ;;  %v3309_v53 = vpop.f32.mrf.mxu0  ;;  %5195 = vmatprep.mubr.msk.f32.mxu1 %vm5406_vm1, %v5405_v34 }
0x17ba   :  { %5181 = vmatmul.mubr.msk.f32.vlgmr.msra.gmra.mxu0 %vm186_vm2, %v3309_v53  ;;  %5203 = vmatprep.subr.mxu1 %v4716_v12 }
0x17bb   :  { %5189 = vmatpush3.msra.mxu0 %v3384_v49  ;;  %5190 = vmatprep.mubr.msk.f32.mxu0 %vm5406_vm1, %v5405_v34 }
0x1878   :  { %v3541_v54 = vpop.f32.mrf.mxu1 }
0x1879   :  { %v3546_v55 = vsel %vm2421_vm5, -1e+30, %v3541_v54 }
0x187a   :  { %v3548_v56 = vmul.f32 0.35355338, %v3546_v55  ;;  %v3465_v57 = vpop.f32.mrf.mxu0  ;;  %v5187_v58 = vpop.f32.mrf.mxu1 }
0x187b   :  { %v3545_v59 = vsel %vm2420_vm6, -1e+30, %v3465_v57 }
0x187c   :  { %v3547_v60 = vmul.f32 0.35355338, %v3545_v59  ;;  %v5182_v61 = vpop.f32.mrf.mxu0  ;;  %v3552_v38 = vsel %vm186_vm2, %v3548_v56, -inf }
0x187d   :  { %3553 = vmax.xlane.f32.xlu1 %v3552_v38 }
0x187e   :  { %v3549_v62 = vsel %vm186_vm2, %v3547_v60, -inf }
0x187f   :  { %3550 = vmax.xlane.f32.xlu0 %v3549_v62  ;;  %v4727_v62 = vld [vmem:[%s6131_s8 + $0x18] sm:$0xff] }
0x1906   :  { %v3554_v63 = vpop.xlane.xlu1 %3553 }
0x1907   :  { %v3556_v2 = vsub.f32 %v3548_v56, %v3554_v63 }
0x1908   :  { %v3551_v4 = vpop.xlane.xlu0 %3550 }
0x1909   :  { %v3559_v5 = vmul.f32 1.442695, %v3556_v2  ;;  %v3555_v6 = vsub.f32 %v3547_v60, %v3551_v4 }
0x190b   :  { %5361 = vpow2.f32 %v3559_v5  ;;  %v3557_v7 = vmul.f32 1.442695, %v3555_v6 }
0x190d   :  { %5363 = vpow2.f32 %v3557_v7 }
0x1918   :  { %v5362_v8 = vpop.eup %5361 }
0x1919   :  { %v3564_v9 = vsel %vm186_vm2, %v5362_v8, 0.0 }
0x191a   :  { %v5364_v10 = vpop.eup %5363  ;;  %3565 = vadd.xlane.f32.xlu1 %v3564_v9 }
0x191b   :  { %v3561_v11 = vsel %vm186_vm2, %v5364_v10, 0.0 }
0x191c   :  { %3562 = vadd.xlane.f32.xlu0 %v3561_v11 }
0x19a3   :  { %v3566_v13 = vpop.xlane.xlu1 %3565 }
0x19a4   :  { %5365 = vrcp.f32 %v3566_v13 }
0x19a5   :  { %v3563_v14 = vpop.xlane.xlu0 %3562 }
0x19a6   :  { %5367 = vrcp.f32 %v3563_v14 }
0x19b1   :  { %v5366_v15 = vpop.eup %5365 }
0x19b2   :  { %v3570_v18 = vmul.f32 %v5366_v15, %v5362_v8 }
0x19b3   :  { %v5368_v19 = vpop.eup %5367 }
0x19b4   :  { %5196 = vmatmul.mubr.msk.f32.vlgmr.msra.gmra.mxu1 %vm186_vm2, %v3570_v18  ;;  %v3569_v27 = vmul.f32 %v5368_v19, %v5364_v10 }
0x19b5   :  { %5204 = vmatpush3.msra.mxu1 %v4716_v12  ;;  %5211 = vmatprep.mubr.msk.f32.mxu1 %vm55_vm0, %v5799_v16  ;;  %v4710_v16 = vld [vmem:[%s6131_s8 + $0x10] sm:$0xff] }
0x19b6   :  { %5205 = vmatprep.subr.mxu1 %v4715_v25  ;;  %5191 = vmatmul.mubr.msk.f32.vlgmr.msra.gmra.mxu0 %vm186_vm2, %v3569_v27 }
0x19b7   :  { %5206 = vmatpush3.msra.mxu1 %v4715_v25  ;;  %5198 = vmatprep.subr.mxu0 %v4710_v16 }
0x19b8   :  { %5207 = vmatprep.subr.mxu1 %v4714_v22  ;;  %5199 = vmatpush3.msra.mxu0 %v4710_v16  ;;  %v4401_v16 = vld [vmem:[%s6134_s11 + $0x18] sm:$0xff] }
0x19b9   :  { %5208 = vmatpush3.msra.mxu1 %v4714_v22  ;;  %5214 = vmatprep.subr.mxu0 %v4716_v12 }
0x19ba   :  { %5209 = vmatprep.subr.mxu1 %v4713_v23 }
0x19bb   :  { %5210 = vmatpush3.msra.mxu1 %v4713_v23 }
0x19bc   :  { %5212 = vmatmul.mubr.msk.f32.vlgmr.msra.gmra.mxu1 %vm55_vm0, %v5802_v17  ;;  %5225 = vmatprep.subr.mxu1 %v5405_v34  ;;  %v3235_v17 = vadd.f32 %v5919_v47, %v5932_v50 }
0x19bd   :  { %5227 = vmatprep.mubr.msk.f32.mxu1 %vm5406_vm1, %v5405_v34 }
0x1a74   :  { %v3713_v24 = vpop.f32.mrf.mxu1 }
0x1a76   :  { %v3640_v26 = vpop.f32.mrf.mxu0  ;;  %v5197_v28 = vpop.f32.mrf.mxu1 }
0x1a77   :  { %5200 = vmatprep.mubr.msk.f32.mxu0 %vm186_vm2, %v3640_v26  ;;  %v4399_v26 = vld [vmem:[%s6134_s11 + $0x8] sm:$0xff]  ;;  %v4398_v28 = vld [vmem:[%s6134_s11] sm:$0xff] }
0x1a78   :  { %v5192_v29 = vpop.f32.mrf.mxu0  ;;  %5201 = vmatmul.mubr.msk.f32.vlgmr.msra.gmra.mxu0 %vm186_vm2, %v3713_v24  ;;  %v4400_v24 = vld [vmem:[%s6134_s11 + $0x10] sm:$0xff] }
0x1a79   :  { %5215 = vmatpush3.msra.mxu0 %v4716_v12  ;;  %5222 = vmatprep.mubr.msk.f32.mxu0 %vm55_vm0, %v5785_v37  ;;  %v3230_v37 = vadd.f32 %v5921_v48, %v5934_v51  ;;  %v4507_v29 = vld [vmem:[%s6136_s13 + $0x78] sm:$0xff] }
0x1a7a   :  { %5216 = vmatprep.subr.mxu0 %v4715_v25 }
0x1a7b   :  { %5217 = vmatpush3.msra.mxu0 %v4715_v25 }
0x1a7c   :  { %5218 = vmatprep.subr.mxu0 %v4714_v22  ;;  %v5213_v30 = vpop.f32.mrf.mxu1 }
0x1a7d   :  { %5219 = vmatpush3.msra.mxu0 %v4714_v22 }
0x1a7e   :  { %5220 = vmatprep.subr.mxu0 %v4713_v23  ;;  %v3873_v1 = vpop.f32.mrf.mxu1 }
0x1a7f   :  { %5221 = vmatpush3.msra.mxu0 %v4713_v23 }
0x1a80   :  { %5223 = vmatmul.mubr.msk.f32.vlgmr.msra.gmra.mxu0 %vm55_vm0, %v5788_v3  ;;  %5230 = vmatprep.subr.mxu0 %v5405_v34 }
0x1a81   :  { %5232 = vmatprep.mubr.msk.f32.mxu0 %vm5406_vm1, %v5405_v34 }
0x1b38   :  { %v5202_v32 = vpop.f32.mrf.mxu0 }
0x1b39   :  { %v5987_v35 = vadd.f32 %v5202_v32, %v3235_v17  ;;  %v4506_v17 = vld [vmem:[%s6136_s13 + $0x70] sm:$0xff]  ;;  %v4505_v32 = vld [vmem:[%s6136_s13 + $0x68] sm:$0xff] }
0x1b3a   :  { %v3791_v39 = vpop.f32.mrf.mxu0 }
0x1b3b   :  { %v5989_v40 = vadd.f32 %v3791_v39, %v3230_v37  ;;  %v4504_v37 = vld [vmem:[%s6136_s13 + $0x60] sm:$0xff]  ;;  %v4502_v39 = vld [vmem:[%s6136_s13 + $0x50] sm:$0xff] }
0x1b40   :  { %v5224_v41 = vpop.f32.mrf.mxu0 }
0x1b41   :  { %5231 = vmatpush3.xpose.msk.msra.mxu0 %vm186_vm2, %v5224_v41 }
0x1b42   :  { %v3948_v3 = vpop.f32.mrf.mxu0  ;;  %5240 = vmatprep.subr.mxu0 %v5405_v34 }
0x1b43   :  { %5226 = vmatpush3.xpose.msk.msra.mxu1 %vm186_vm2, %v3948_v3 }
0x1b44   :  { %5233 = vmatmul.mubr.msk.f32.vlgmr.msra.gmra.mxu0 %vm186_vm2, %v5213_v30  ;;  %5235 = vmatprep.subr.mxu1 %v5405_v34  ;;  %v4499_v30 = vld [vmem:[%s6136_s13 + $0x38] sm:$0xff] }
0x1b45   :  { %5241 = vmatpush3.msra.mxu0 %v5224_v41  ;;  %5242 = vmatprep.mubr.msk.f32.mxu0 %vm5406_vm1, %v5405_v34  ;;  %v4500_v41 = vld [vmem:[%s6136_s13 + $0x40] sm:$0xff] }
0x1b46   :  { %5228 = vmatmul.mubr.msk.f32.vlgmr.msra.gmra.mxu1 %vm186_vm2, %v3873_v1  ;;  %5250 = vmatprep.subr.mxu0 %v4401_v16  ;;  %v4497_v1 = vld [vmem:[%s6136_s13 + $0x28] sm:$0xff] }
0x1b47   :  { %5236 = vmatpush3.msra.mxu1 %v3948_v3  ;;  %5237 = vmatprep.mubr.msk.f32.mxu1 %vm5406_vm1, %v5405_v34  ;;  %v4498_v3 = vld [vmem:[%s6136_s13 + $0x30] sm:$0xff] }
0x1b48   :  { %5245 = vmatprep.subr.mxu1 %v4727_v62 }
0x1c04   :  { %v4105_v0 = vpop.f32.mrf.mxu0 }
0x1c05   :  { %v4110_v42 = vsel %vm2421_vm5, -1e+30, %v4105_v0  ;;  %v4496_v0 = vld [vmem:[%s6136_s13 + $0x20] sm:$0xff] }
0x1c06   :  { %v4112_v43 = vmul.f32 0.35355338, %v4110_v42  ;;  %v4029_v44 = vpop.f32.mrf.mxu1  ;;  %v5234_v45 = vpop.f32.mrf.mxu0 }
0x1c07   :  { %v4109_v46 = vsel %vm2420_vm6, -1e+30, %v4029_v44 }
0x1c08   :  { %v4111_v47 = vmul.f32 0.35355338, %v4109_v46  ;;  %v5229_v48 = vpop.f32.mrf.mxu1  ;;  %v4116_v33 = vsel %vm186_vm2, %v4112_v43, -inf }
0x1c09   :  { %4117 = vmax.xlane.f32.xlu1 %v4116_v33 }
0x1c0a   :  { %v4113_v49 = vsel %vm186_vm2, %v4111_v47, -inf }
0x1c0b   :  { %4114 = vmax.xlane.f32.xlu0 %v4113_v49 }
0x1c92   :  { %v4118_v50 = vpop.xlane.xlu1 %4117 }
0x1c93   :  { %v4120_v34 = vsub.f32 %v4112_v43, %v4118_v50 }
0x1c94   :  { %v4115_v51 = vpop.xlane.xlu0 %4114 }
0x1c95   :  { %v4123_v52 = vmul.f32 1.442695, %v4120_v34  ;;  %v4119_v20 = vsub.f32 %v4111_v47, %v4115_v51  ;;  %v5381_v34 = vld [vmem:[%s6132_s9] ss:$0 sm:$0xff] }
0x1c97   :  { %5369 = vpow2.f32 %v4123_v52  ;;  %v4121_v53 = vmul.f32 1.442695, %v4119_v20  ;;  %v5382_v20 = vld [vmem:[%s6133_s10] ss:$0 sm:$0xff] }
0x1c99   :  { %5371 = vpow2.f32 %v4121_v53 }
0x1ca4   :  { %v5370_v54 = vpop.eup %5369 }
0x1ca5   :  { %v4128_v21 = vsel %vm186_vm2, %v5370_v54, 0.0 }
0x1ca6   :  { %v5372_v55 = vpop.eup %5371  ;;  %4129 = vadd.xlane.f32.xlu1 %v4128_v21  ;;  %v4495_v21 = vld [vmem:[%s6136_s13 + $0x18] sm:$0xff] }
0x1ca7   :  { %v4125_v56 = vsel %vm186_vm2, %v5372_v55, 0.0 }
0x1ca8   :  { %4126 = vadd.xlane.f32.xlu0 %v4125_v56  ;;  %v4493_v56 = vld [vmem:[%s6136_s13 + $0x8] sm:$0xff] }
0x1d2f   :  { %v4130_v57 = vpop.xlane.xlu1 %4129 }
0x1d30   :  { %5373 = vrcp.f32 %v4130_v57  ;;  %v4492_v57 = vld [vmem:[%s6136_s13] sm:$0xff] }
0x1d31   :  { %v4127_v58 = vpop.xlane.xlu0 %4126 }
0x1d32   :  { %5375 = vrcp.f32 %v4127_v58  ;;  %v4730_v58 = vld [vmem:[%s6135_s12] ss:$0 sm:$0xff] }
0x1d3d   :  { %v5374_v59 = vpop.eup %5373 }
0x1d3e   :  { %v4134_v60 = vmul.f32 %v5374_v59, %v5370_v54 }
0x1d3f   :  { %v5376_v61 = vpop.eup %5375 }
0x1d40   :  { %5243 = vmatmul.mubr.msk.f32.vlgmr.msra.gmra.mxu0 %vm186_vm2, %v4134_v60  ;;  %v4133_v38 = vmul.f32 %v5376_v61, %v5372_v55  ;;  %v4494_v55 = vld [vmem:[%s6136_s13 + $0x10] sm:$0xff] }
0x1d41   :  { %5251 = vmatpush3.msra.mxu0 %v4401_v16 }
0x1d42   :  { %5238 = vmatmul.mubr.msk.f32.vlgmr.msra.gmra.mxu1 %vm186_vm2, %v4133_v38  ;;  %5252 = vmatprep.subr.mxu0 %v4400_v24 }
0x1d43   :  { %5246 = vmatpush3.msra.mxu1 %v4727_v62  ;;  %5253 = vmatpush3.msra.mxu0 %v4400_v24 }
0x1d44   :  { %5254 = vmatprep.subr.mxu0 %v4399_v26  ;;  %5261 = vmatprep.subr.mxu1 %v4507_v29 }
0x1d45   :  { %5255 = vmatpush3.msra.mxu0 %v4399_v26 }
0x1d46   :  { %5256 = vmatprep.subr.mxu0 %v4398_v28 }
0x1d47   :  { %5257 = vmatpush3.msra.mxu0 %v4398_v28 }
0x1e00   :  { %v4277_v63 = vpop.f32.mrf.mxu0 }
0x1e02   :  { %v4204_v2 = vpop.f32.mrf.mxu1  ;;  %v5244_v4 = vpop.f32.mrf.mxu0 }
0x1e03   :  { %5247 = vmatprep.mubr.msk.f32.mxu1 %vm186_vm2, %v4204_v2  ;;  %v4733_v2 = vld [vmem:[%s6137_s14] ss:$0 sm:$0xff] }
0x1e04   :  { %v5239_v5 = vpop.f32.mrf.mxu1  ;;  %5248 = vmatmul.mubr.msk.f32.vlgmr.msra.gmra.mxu1 %vm186_vm2, %v4277_v63 }
0x1e05   :  { %5262 = vmatpush3.msra.mxu1 %v4507_v29 }
0x1e06   :  { %5263 = vmatprep.subr.mxu1 %v4506_v17 }
0x1e07   :  { %5264 = vmatpush3.msra.mxu1 %v4506_v17 }
0x1e08   :  { %5265 = vmatprep.subr.mxu1 %v4505_v32 }
0x1e09   :  { %5266 = vmatpush3.msra.mxu1 %v4505_v32 }
0x1e0a   :  { %5267 = vmatprep.subr.mxu1 %v4504_v37 }
0x1e0b   :  { %5268 = vmatpush3.msra.mxu1 %v4504_v37 }
0x1ec4   :  { %v5249_v6 = vpop.f32.mrf.mxu1 }
0x1ec5   :  { %v4365_v7 = vadd.f32 %v5249_v6, %v5987_v35  ;;  %v4503_v35 = vld [vmem:[%s6136_s13 + $0x58] sm:$0xff] }
0x1ec6   :  { %v4355_v8 = vpop.f32.mrf.mxu1  ;;  %5269 = vmatprep.subr.mxu1 %v4503_v35 }
0x1ec7   :  { %v6018_v9 = vadd.f32 %v4365_v7, %v5752_v31  ;;  %v4364_v10 = vadd.f32 %v4355_v8, %v5989_v40  ;;  %5270 = vmatpush3.msra.mxu1 %v4503_v35  ;;  %v4501_v40 = vld [vmem:[%s6136_s13 + $0x48] sm:$0xff]  ;;  %s5407_s13 = smov [#allocation2]  }
0x1ec8   :  { %5271 = vmatprep.subr.mxu1 %v4502_v39  ;;  %s4599_s30 = sshll.u32 %s5407_s13, 4  ;;  %s4600_s30 = int_to_ptr.vmem [resolvable:$true] %s4599_s30 }
0x1ec9   :  { %v6022_v11 = vadd.f32 %v4364_v10, %v5756_v36  ;;  %v4371_v12 = vsel %vm55_vm0, %v6018_v9, 0.0  ;;  %5272 = vmatpush3.msra.mxu1 %v4502_v39  ;;  %s5383_s12 = scalar_lea.vmem %s4600_s30, 256  ;;  %p5388_p1 = scmp.lt.s32.totalorder %s4600_s30, %s4600_s30 }
0x1eca   :  { %4372 = vadd.xlane.f32.xlu1 %v4371_v12  ;;  %5273 = vmatprep.subr.mxu1 %v4501_v40  ;;  %p5384_p0 = scmp.ne.s32.totalorder %s4600_s30, %s5383_s12  ;;  %p5389_p2 = scmp.lt.s32.totalorder %s5383_s12, %s5383_s12 }
0x1ecb   :  { %v4368_v13 = vsel %vm55_vm0, %v6022_v11, 0.0  ;;  %5274 = vmatpush3.msra.mxu1 %v4501_v40 }
0x1ecc   :  { %4369 = vadd.xlane.f32.xlu0 %v4368_v13  ;;  %5275 = vmatprep.subr.mxu1 %v4500_v41  ;;  %p5390_p3 = por %p5389_p2, %p5388_p1 }
0x1ecd   :  { %5276 = vmatpush3.msra.mxu1 %v4500_v41 }
0x1ece   :  { %5277 = vmatprep.subr.mxu1 %v4499_v30  ;;  %p5391_p4 = pnand %p5390_p3, %p5384_p0 }
0x1ecf   :  { %5278 = vmatpush3.msra.mxu1 %v4499_v30 }
0x1ed0   :  { %5279 = vmatprep.subr.mxu1 %v4498_v3 }
0x1ed1   :  { %5280 = vmatpush3.msra.mxu1 %v4498_v3 }
0x1ed2   :  { %5281 = vmatprep.subr.mxu1 %v4497_v1 }
0x1ed3   :  { %5282 = vmatpush3.msra.mxu1 %v4497_v1 }
0x1ed4   :  { %5283 = vmatprep.subr.mxu1 %v4496_v0 }
0x1ed5   :  { %5284 = vmatpush3.msra.mxu1 %v4496_v0 }
0x1ed6   :  { %5285 = vmatprep.subr.mxu1 %v4495_v21 }
0x1ed7   :  { %5286 = vmatpush3.msra.mxu1 %v4495_v21 }
0x1ed8   :  { %5287 = vmatprep.subr.mxu1 %v4494_v55 }
0x1ed9   :  { %5288 = vmatpush3.msra.mxu1 %v4494_v55 }
0x1eda   :  { %5289 = vmatprep.subr.mxu1 %v4493_v56 }
0x1edb   :  { %5290 = vmatpush3.msra.mxu1 %v4493_v56 }
0x1edc   :  { %5291 = vmatprep.subr.mxu1 %v4492_v57 }
0x1edd   :  { %5292 = vmatpush3.msra.mxu1 %v4492_v57 }
0x1f53   :  { %v4373_v14 = vpop.xlane.xlu1 %4372 }
0x1f54   :  { %v4375_v15 = vmul.f32 0.03125, %v4373_v14 }
0x1f55   :  { %v4370_v18 = vpop.xlane.xlu0 %4369 }
0x1f56   :  { %v6029_v19 = vsub.f32 %v6018_v9, %v4375_v15  ;;  %v4374_v31 = vmul.f32 0.03125, %v4370_v18 }
0x1f58   :  { %v6032_v25 = vsub.f32 %v6022_v11, %v4374_v31  ;;  %v4379_v36 = vmul.f32 %v6029_v19, %v6029_v19 }
0x1f5a   :  { %v4383_v27 = vsel %vm55_vm0, %v4379_v36, 0.0  ;;  %v4378_v22 = vmul.f32 %v6032_v25, %v6032_v25 }
0x1f5b   :  { %4384 = vadd.xlane.f32.xlu1 %v4383_v27 }
0x1f5c   :  { %v4380_v23 = vsel %vm55_vm0, %v4378_v22, 0.0 }
0x1f5d   :  { %4381 = vadd.xlane.f32.xlu0 %v4380_v23 }
0x1fe4   :  { %v4385_v42 = vpop.xlane.xlu1 %4384 }
0x1fe5   :  { %v4387_v43 = vmul.f32 0.03125, %v4385_v42 }
0x1fe6   :  { %v4382_v44 = vpop.xlane.xlu0 %4381 }
0x1fe7   :  { %v4389_v45 = vadd.f32 1e-05, %v4387_v43  ;;  %v4386_v46 = vmul.f32 0.03125, %v4382_v44 }
0x1fe9   :  { %5377 = vrsqrt.f32 %v4389_v45  ;;  %v4388_v47 = vadd.f32 1e-05, %v4386_v46 }
0x1feb   :  { %5379 = vrsqrt.f32 %v4388_v47 }
0x1ff6   :  { %v5378_v48 = vpop.eup %5377 }
0x1ff7   :  { %v4393_v33 = vmul.f32 %v5378_v48, %v6029_v19 }
0x1ff8   :  { %v5380_v49 = vpop.eup %5379 }
0x1ff9   :  { %v4392_v50 = vmul.f32 %v5380_v49, %v6032_v25  ;;  %v4395_v51 = vmul.f32 %v5381_v34, %v4393_v33 }
0x1ffb   :  { %v4394_v52 = vmul.f32 %v5381_v34, %v4392_v50  ;;  %v4397_v54 = vadd.f32 %v5382_v20, %v4395_v51 }
0x1ffd   :  { %v4396_v53 = vadd.f32 %v5382_v20, %v4394_v52 }
0x1fff   :  { %5258 = vmatprep.mubr.msk.f32.mxu0 %vm55_vm0, %v4396_v53 }
0x2000   :  { %5259 = vmatmul.mubr.msk.f32.vlgmr.msra.gmra.mxu0 %vm55_vm0, %v4397_v54 }
0x20c0   :  { %v5260_v59 = vpop.f32.mrf.mxu0 }
0x20c1   :  { %v4487_v60 = vadd.f32 %v5260_v59, %v4730_v58 }
0x20c2   :  { %v4481_v61 = vpop.f32.mrf.mxu0 }
0x20c3   :  { %v4482_v38 = vadd.f32 %v4730_v58, %v4481_v61  ;;  %v4491_v63 = vmax.f32 %v4487_v60, 0.0 }
0x20c5   :  { %v4490_v62 = vmax.f32 %v4482_v38, 0.0 }
0x20c7   :  { %5293 = vmatprep.mubr.f32.mxu1 %v4490_v62 }
0x20c8   :  { %5294 = vmatmul.mubr.f32.vlgmr.msra.gmra.mxu1 %v4491_v63 }
0x2188   :  { %v5295_v4 = vpop.f32.mrf.mxu1 }
0x2189   :  { %v4587_v5 = vadd.f32 %v5295_v4, %v4733_v2 }
0x218a   :  { %v4581_v6 = vpop.f32.mrf.mxu1 }
0x218b   :  { %v4591_v7 = vadd.f32 %v4587_v5, %v6018_v9  ;;  %v4582_v8 = vadd.f32 %v4733_v2, %v4581_v6 }
0x218d   :  { %4593 = vst.msk [vmem:[#allocation2 + $0x8] sm:$0xff] %vm55_vm0, %v4591_v7  ;;  %v4590_v10 = vadd.f32 %v4582_v8, %v6022_v11 }
0x218f   :  { %4592 = vst.msk [vmem:[#allocation2] sm:$0xff] %vm55_vm0, %v4590_v10 }
0x2190   :  { %5394 = shalt.err (!%p5391_p4)
}
0x2191   :  { %s5408_s14 = smov 128   ;;  %s5409_s16 = smov 8  }
0x2192   :  { %4605 = dma.vmem_to_hbm [thread:$0]  %s4600_s30, 256, %s6138_s15, [#allocation3], %s5408_s14, %s5408_s14, %s5409_s16  }
0x2193   :  { %5403 = dma.done.wait [#allocation3], 256  }
0x2194   :  { %5404 = vsyncadd [#allocation3], 4294967040 }
0x2195   :  { %4609 = vsyncpa [#allocation3], 1 }

</bundles_post_ra>
